<compile_context>
chip_gen: v7x
topology: tpu7x:2x2x1
jax: 0.10.0
libtpu: 0.0.40
codegen_flags: <defaults>
</compile_context>

<pallas_src>
import numpy as np
import jax
import jax.numpy as jnp
from jax.experimental import pallas as pl
from jax.experimental.pallas import tpu as pltpu


def _round_up(x, m):
    return (x + m - 1) // m * m


# ----------------------------------------------------------------------------
# Wrapper: glue (padding, one-hots, fused weights) + pallas_call
# ----------------------------------------------------------------------------
def my_model4_pallas(context, attention, mention_map, entity_map, hts, params,
                     block_size=64, p_tile=8):
    f32, bf16 = jnp.float32, jnp.bfloat16
    B, L, H = context.shape
    heads = attention.shape[1]
    E, M = entity_map.shape[1], entity_map.shape[2]
    P = hts.shape[1]
    R = params["bc"].shape[-1]
    BS = block_size
    nb = H // BS

    Ep = _round_up(E, 8)
    Mp = _round_up(M, 8)
    PT = _round_up(p_tile, 8)
    Pp = _round_up(max(P, PT), PT)
    Rp = _round_up(R, 128)            # lane-dense output width
    HL = heads * L
    RBS = R * BS
    n_pt = Pp // PT

    # ---- glue: masks / one-hots, padded to sublane-friendly sizes ----
    ht_mask = (hts.sum(-1) != 0)[..., None].astype(f32)                     # [B,P,1]
    ht_mask = jnp.pad(ht_mask, ((0, 0), (0, Pp - P), (0, 0)))
    h_oh = jnp.pad(jax.nn.one_hot(hts[..., 0], Ep, dtype=f32),
                   ((0, 0), (0, Pp - P), (0, 0)))                           # [B,Pp,Ep]
    t_oh = jnp.pad(jax.nn.one_hot(hts[..., 1], Ep, dtype=f32),
                   ((0, 0), (0, Pp - P), (0, 0)))

    ctx_bf = context.astype(bf16)                                           # [B,L,H]
    # heads folded onto the lane axis -> one wide MXU matmul instead of a head loop
    attn_flat = attention.transpose(0, 2, 1, 3).reshape(B, L, HL).astype(bf16)
    mmap_p = jnp.pad(mention_map, ((0, 0), (0, Mp - M), (0, 0))).astype(bf16)
    emap_p = jnp.pad(entity_map, ((0, 0), (0, Ep - E), (0, Mp - M))).astype(bf16)

    # ---- glue: fused dense weight [3H,2H] for X = [h|t|ci] ----
    Z = jnp.zeros((H, H), f32)
    w_fused = jnp.concatenate([
        jnp.concatenate([params["wh"], Z], axis=1),
        jnp.concatenate([Z, params["wt"]], axis=1),
        jnp.concatenate([params["whc"], params["wtc"]], axis=1)],
        axis=0).astype(bf16)                                                # [3H,2H]
    b_fused = jnp.concatenate([params["bh"] + params["bhc"],
                               params["bt"] + params["btc"]], axis=1)       # [1,2H]

    # ---- glue: group-bilinear weight, per-block layout [n*BS+i, r*BS+j] ----
    wc4 = params["wc4"]                                                     # [nb,BS,BS,R]
    w_cls = wc4.transpose(0, 1, 3, 2).reshape(nb * BS, RBS).astype(bf16)    # [nb*BS,R*BS]
    # Sel[r*BS+j, r'] = (r == r'), zero-padded to Rp lanes
    sel = jnp.pad(jnp.repeat(jnp.eye(R, dtype=f32), BS, axis=0),
                  ((0, 0), (0, Rp - R)))                                    # [R*BS,Rp]
    bc_pad = jnp.pad(params["bc"].astype(f32), ((0, 0), (0, Rp - R)))       # [1,Rp]

    # ------------------------------------------------------------------------
    # Kernel: grid = (batch, P-tile). Per-batch pooling hoisted at pt == 0.
    # ------------------------------------------------------------------------
    def kernel(ctx_ref, attn_ref, mmap_ref, emap_ref, hoh_ref, toh_ref, htm_ref,
               wf_ref, bf_ref, wcls_ref, sel_ref, bc_ref,
               pred_ref, ent_scr, ea_scr):
        pt = pl.program_id(1)

        @pl.when(pt == 0)
        def _():
            ctx = ctx_ref[0]                      # [L,H]   bf16
            mmap = mmap_ref[0]                    # [Mp,L]  bf16
            emap = emap_ref[0]                    # [Ep,Mp] bf16
            attn = attn_ref[0]                    # [L,HL]  bf16
            emap32 = emap.astype(jnp.float32)

            # stable exp -> sum -> log mention pooling (shift by per-column max)
            logits = jnp.dot(mmap, ctx, preferred_element_type=jnp.float32)   # [Mp,H]
            gmax = jnp.max(logits, axis=0, keepdims=True)                     # [1,H]
            mention = jnp.exp(logits - gmax)                                  # [Mp,H]
            ent = jnp.dot(emap32, mention, preferred_element_type=jnp.float32)
            empty = jnp.sum(emap32, axis=-1, keepdims=True) == 0.0
            ent_scr[...] = jnp.where(
                empty, 0.0, gmax + jnp.log(jnp.maximum(ent, 1e-30)))          # [Ep,H]

            # entity-over-token distribution; one wide matmul over ALL heads
            etok = jnp.dot(emap32, mmap.astype(jnp.float32),
                           preferred_element_type=jnp.float32)                # [Ep,L]
            inv = pl.reciprocal(jnp.sum(etok, axis=-1, keepdims=True) + 1e-20,
                                approx=True)
            em = (etok * inv).astype(jnp.bfloat16)
            ea_scr[...] = jnp.dot(em, attn,
                                  preferred_element_type=jnp.float32)         # [Ep,HL]

        ctx = ctx_ref[0]                          # [L,H] bf16
        hoh = hoh_ref[0]                          # [PT,Ep] f32
        toh = toh_ref[0]
        htm = htm_ref[0]                          # [PT,1] f32

        ent = ent_scr[...]                        # [Ep,H] f32
        h = jnp.dot(hoh, ent, preferred_element_type=jnp.float32) * htm       # [PT,H]
        t = jnp.dot(toh, ent, preferred_element_type=jnp.float32) * htm

        ea = ea_scr[...]                          # [Ep,HL] f32
        ha = jnp.dot(hoh, ea, preferred_element_type=jnp.float32)             # [PT,HL]
        ta = jnp.dot(toh, ea, preferred_element_type=jnp.float32)
        prod = ha * ta
        ca = prod[:, 0:L]
        for hd in range(1, heads):                # static head-sum over lane slices
            ca = ca + prod[:, hd * L:(hd + 1) * L]
        inv_ca = pl.reciprocal(jnp.sum(ca, axis=-1, keepdims=True) + 1e-20,
                               approx=True)
        ca = (ca * inv_ca).astype(jnp.bfloat16)
        ci = jnp.dot(ca, ctx, preferred_element_type=jnp.float32) * htm       # [PT,H]

        # fused dense + tanh: [h|t|ci] @ [[wh,0],[0,wt],[whc,wtc]]
        x = jnp.concatenate([h, t, ci], axis=-1).astype(jnp.bfloat16)         # [PT,3H]
        y = jnp.tanh(jnp.dot(x, wf_ref[...], preferred_element_type=jnp.float32)
                     + bf_ref[...])                                           # [PT,2H]
        h2 = y[:, :H].astype(jnp.bfloat16)
        t2 = y[:, H:].astype(jnp.bfloat16)

        # group bilinear: per-block matmuls, no block-diagonal operands
        s_acc = jnp.zeros((PT, RBS), jnp.float32)
        for n in range(nb):                       # static, nb = H // BS
            hn = h2[:, n * BS:(n + 1) * BS]                                   # [PT,BS]
            tn = t2[:, n * BS:(n + 1) * BS].astype(jnp.float32)
            an = jnp.dot(hn, wcls_ref[n * BS:(n + 1) * BS, :],
                         preferred_element_type=jnp.float32)                  # [PT,R*BS]
            s_acc = s_acc + an * jnp.tile(tn, (1, R))
        pred = jnp.dot(s_acc, sel_ref[...],
                       preferred_element_type=jnp.float32) + bc_ref[...]      # [PT,Rp]
        pred_ref[0] = pred.astype(pred_ref.dtype)

    # ---- BlockSpecs ----
    def per_batch(shape):
        return pl.BlockSpec((1,) + tuple(shape[1:]), lambda b, p: (b, 0, 0))

    def per_pair_tile(last):
        return pl.BlockSpec((1, PT, last), lambda b, p: (b, p, 0))

    def weight(shape):
        return pl.BlockSpec(tuple(shape), lambda b, p: (0, 0))

    in_specs = [
        per_batch(ctx_bf.shape),
        per_batch(attn_flat.shape),     # TODO(synk): tile at production L/heads (v7x)
        per_batch(mmap_p.shape),
        per_batch(emap_p.shape),
        per_pair_tile(Ep),
        per_pair_tile(Ep),
        per_pair_tile(1),
        weight(w_fused.shape),
        weight(b_fused.shape),
        weight(w_cls.shape),
        weight(sel.shape),
        weight(bc_pad.shape),
    ]
    out_spec = pl.BlockSpec((1, PT, Rp), lambda b, p: (b, p, 0))

    # scoped-VMEM hint sized from the actual block footprint (+ pipelining headroom)
    block_bytes = (2 * (L * H + L * HL + Mp * L + Ep * Mp + 6 * H * H + nb * BS * RBS)
                   + 4 * (2 * PT * Ep + PT + 2 * H + RBS * Rp + Rp + PT * Rp
                          + Ep * H + Ep * HL))
    vmem_limit = int(min(64 * 2 ** 20, max(16 * 2 ** 20, 3 * block_bytes)))

    out = pl.pallas_call(
        kernel,
        out_shape=jax.ShapeDtypeStruct((B, Pp, Rp), jnp.float32),
        grid_spec=pltpu.PrefetchScalarGridSpec(
            num_scalar_prefetch=0,
            grid=(B, n_pt),
            in_specs=in_specs,
            out_specs=out_spec,
            scratch_shapes=[pltpu.VMEM((Ep, H), jnp.float32),
                            pltpu.VMEM((Ep, HL), jnp.float32)],
        ),
        compiler_params=pltpu.CompilerParams(
            dimension_semantics=("parallel", "arbitrary"),
            vmem_limit_bytes=vmem_limit,
        ),
    )(ctx_bf, attn_flat, mmap_p, emap_p, h_oh, t_oh, ht_mask,
      w_fused, b_fused, w_cls, sel, bc_pad)

    return out[:, :P, :R]


# ----------------------------------------------------------------------------
# Pure-JAX f32 reference mirroring the PyTorch forward (correctness check)
# ----------------------------------------------------------------------------
def reference_forward(context, attention, mention_map, entity_map, hts, params, block_size=64):
    B, L, H = context.shape
    R = params["bc"].shape[-1]
    nb = H // block_size
    ht_mask = (hts.sum(-1) != 0)[..., None].astype(jnp.float32)

    # get_ht
    entity_mask = entity_map.sum(-1, keepdims=True) == 0
    mention = jnp.exp(mention_map @ context)
    entity = entity_map @ mention
    entity = jnp.where(entity_mask, 1.0, entity)
    entity = jnp.log(entity)
    h = jnp.stack([entity[i][hts[i, :, 0]] for i in range(B)]) * ht_mask
    t = jnp.stack([entity[i][hts[i, :, 1]] for i in range(B)]) * ht_mask

    # entity_map over tokens + context_pooling
    emap_tok = entity_map @ mention_map
    em = emap_tok / (emap_tok.sum(-1, keepdims=True) + 1e-20)
    ea = jnp.einsum("bel,bhlk->bhek", em, attention)                 # [B,heads,E,L]
    h_att = jnp.stack([ea[i][:, hts[i, :, 0]] for i in range(B)])
    t_att = jnp.stack([ea[i][:, hts[i, :, 1]] for i in range(B)])
    ca = (h_att * t_att).sum(axis=1)
    ca = ca / (ca.sum(-1, keepdims=True) + 1e-20)
    ci = (ca @ context) * ht_mask

    h2 = jnp.tanh(h @ params["wh"] + params["bh"] + ci @ params["whc"] + params["bhc"])
    t2 = jnp.tanh(t @ params["wt"] + params["bt"] + ci @ params["wtc"] + params["btc"])

    # group_biLinear
    P = h2.shape[1]
    h3 = h2.reshape(B, P, nb, block_size)
    t3 = t2.reshape(B, P, nb, block_size)
    feat = (h3[..., :, None] * t3[..., None, :]).reshape(B, P, nb * block_size * block_size)
    pred = feat @ params["wc4"].reshape(nb * block_size * block_size, R) + params["bc"]
    return pred


def init_params(key, H, R, BS):
    nb = H // BS
    ks = jax.random.split(key, 6)

    def dense(k, din, dout, scale=0.05):
        kw, kb = jax.random.split(k)
        return (jax.random.normal(kw, (din, dout), jnp.float32) * scale,
                jax.random.normal(kb, (1, dout), jnp.float32) * scale)

    wh, bh = dense(ks[0], H, H)
    wt, bt = dense(ks[1], H, H)
    whc, bhc = dense(ks[2], H, H)
    wtc, btc = dense(ks[3], H, H)
    wc4 = jax.random.normal(ks[4], (nb, BS, BS, R), jnp.float32) * 0.02
    bc = jax.random.normal(ks[5], (1, R), jnp.float32) * 0.02
    return dict(wh=wh, bh=bh, wt=wt, bt=bt, whc=whc, bhc=bhc, wtc=wtc, btc=btc,
                wc4=wc4, bc=bc)


if __name__ == "__main__":
    B, L, H, HEADS, M, E, R, BS = 2, 16, 128, 2, 6, 4, 8, 64

    key = jax.random.PRNGKey(0)
    k_ctx, k_attn, k_par = jax.random.split(key, 3)

    context = jax.random.normal(k_ctx, (B, L, H), jnp.float32) * 0.3
    attention = jax.nn.softmax(
        jax.random.normal(k_attn, (B, HEADS, L, L), jnp.float32), axis=-1)

    mention_map = np.zeros((B, M, L), np.float32)
    for b in range(B):
        for m in range(M):
            mention_map[b, m, (2 * m + b + 1) % L] = 1.0
    entity_map = np.zeros((B, E, M), np.float32)
    for b in range(B):
        for m in range(M):
            entity_map[b, m % E, m] = 1.0
    entity_map[1, 3, :] = 0.0   # one empty entity -> exercises the masked_fill path

    pairs = [(i, j) for i in range(E) for j in range(E) if i != j]  # P = 12
    hts = np.array([pairs, pairs], np.int32)
    hts[1, -2:, :] = 0          # padded pairs in batch 1 -> ht_mask = 0

    mention_map = jnp.asarray(mention_map)
    entity_map = jnp.asarray(entity_map)
    hts = jnp.asarray(hts)

    params = init_params(k_par, H, R, BS)

    pred = my_model4_pallas(context, attention, mention_map, entity_map, hts, params,
                            block_size=BS, p_tile=8)
    pred = jax.block_until_ready(pred)

    ref = reference_forward(context, attention, mention_map, entity_map, hts, params, BS)
    ref = jax.block_until_ready(ref)

    # bf16 MXU operands in the kernel vs f32 reference -> relaxed tolerance
    if not np.allclose(np.asarray(pred), np.asarray(ref), rtol=8e-2, atol=8e-2):
        diff = np.max(np.abs(np.asarray(pred) - np.asarray(ref)))
        raise AssertionError(f"Pallas kernel does not match reference (max diff {diff})")
    print("KERNEL_OK")
</pallas_src>

<mosaic_0001>
module attributes {stable_mosaic.version = 11 : i64} {
  func.func @kernel(%arg0: i32, %arg1: i32, %arg2: memref<1x16x128xbf16, #tpu.memory_space<vmem>>, %arg3: memref<1x16x32xbf16, #tpu.memory_space<vmem>>, %arg4: memref<1x8x16xbf16, #tpu.memory_space<vmem>>, %arg5: memref<1x8x8xbf16, #tpu.memory_space<vmem>>, %arg6: memref<1x8x8xf32, #tpu.memory_space<vmem>>, %arg7: memref<1x8x8xf32, #tpu.memory_space<vmem>>, %arg8: memref<1x8x1xf32, #tpu.memory_space<vmem>>, %arg9: memref<384x256xbf16, #tpu.memory_space<vmem>>, %arg10: memref<1x256xf32, #tpu.memory_space<vmem>>, %arg11: memref<128x512xbf16, #tpu.memory_space<vmem>>, %arg12: memref<512x128xf32, #tpu.memory_space<vmem>>, %arg13: memref<1x128xf32, #tpu.memory_space<vmem>>, %arg14: memref<1x8x128xf32, #tpu.memory_space<vmem>>, %arg15: memref<8x128xf32, #tpu.memory_space<vmem>>, %arg16: memref<8x32xf32, #tpu.memory_space<vmem>>) attributes {dimension_semantics = [#tpu.dimension_semantics<parallel>, #tpu.dimension_semantics<arbitrary>], iteration_bounds = array<i64: 2, 2>, scalar_prefetch = 0 : i64, scratch_operands = 2 : i64, tpu.core_type = #tpu.core_type<tc>, window_params = [{transform_indices = @transform_0, window_bounds = array<i64: 1, 16, 128>}, {transform_indices = @transform_1, window_bounds = array<i64: 1, 16, 32>}, {transform_indices = @transform_2, window_bounds = array<i64: 1, 8, 16>}, {transform_indices = @transform_3, window_bounds = array<i64: 1, 8, 8>}, {transform_indices = @transform_4, window_bounds = array<i64: 1, 8, 8>}, {transform_indices = @transform_5, window_bounds = array<i64: 1, 8, 8>}, {transform_indices = @transform_6, window_bounds = array<i64: 1, 8, 1>}, {pipeline_mode = #tpu.pipeline_mode<synchronous>, transform_indices = @transform_7, window_bounds = array<i64: 384, 256>}, {pipeline_mode = #tpu.pipeline_mode<synchronous>, transform_indices = @transform_8, window_bounds = array<i64: 1, 256>}, {pipeline_mode = #tpu.pipeline_mode<synchronous>, transform_indices = @transform_9, window_bounds = array<i64: 128, 512>}, {pipeline_mode = #tpu.pipeline_mode<synchronous>, transform_indices = @transform_10, window_bounds = array<i64: 512, 128>}, {pipeline_mode = #tpu.pipeline_mode<synchronous>, transform_indices = @transform_11, window_bounds = array<i64: 1, 128>}, {transform_indices = @transform_12, window_bounds = array<i64: 1, 8, 128>}]} {
    %c0_i32 = arith.constant 0 : i32
    %0 = arith.cmpi eq, %arg1, %c0_i32 : i32
    %1 = arith.extui %0 : i1 to i32
    %c0_i32_0 = arith.constant 0 : i32
    %2 = arith.cmpi ne, %1, %c0_i32_0 : i32
    scf.if %2 {
      %c0_41 = arith.constant 0 : index
      %c0_42 = arith.constant 0 : index
      %c0_43 = arith.constant 0 : index
      %73 = vector.load %arg2[%c0_41, %c0_42, %c0_43] : memref<1x16x128xbf16, #tpu.memory_space<vmem>>, vector<1x16x128xbf16>
      %74 = vector.shape_cast %73 : vector<1x16x128xbf16> to vector<16x128xbf16>
      %c0_44 = arith.constant 0 : index
      %c0_45 = arith.constant 0 : index
      %c0_46 = arith.constant 0 : index
      %75 = vector.load %arg4[%c0_44, %c0_45, %c0_46] : memref<1x8x16xbf16, #tpu.memory_space<vmem>>, vector<1x8x16xbf16>
      %76 = vector.shape_cast %75 : vector<1x8x16xbf16> to vector<8x16xbf16>
      %c0_47 = arith.constant 0 : index
      %c0_48 = arith.constant 0 : index
      %c0_49 = arith.constant 0 : index
      %77 = vector.load %arg5[%c0_47, %c0_48, %c0_49] : memref<1x8x8xbf16, #tpu.memory_space<vmem>>, vector<1x8x8xbf16>
      %78 = vector.shape_cast %77 : vector<1x8x8xbf16> to vector<8x8xbf16>
      %c0_50 = arith.constant 0 : index
      %c0_51 = arith.constant 0 : index
      %c0_52 = arith.constant 0 : index
      %79 = vector.load %arg3[%c0_50, %c0_51, %c0_52] : memref<1x16x32xbf16, #tpu.memory_space<vmem>>, vector<1x16x32xbf16>
      %80 = vector.shape_cast %79 : vector<1x16x32xbf16> to vector<16x32xbf16>
      %81 = arith.extf %78 : vector<8x8xbf16> to vector<8x8xf32>
      %cst_53 = arith.constant dense<0.000000e+00> : vector<8x128xf32>
      %82 = tpu.matmul %76, %74, %cst_53 {dimension_numbers = #tpu.dot_dimension_numbers<[1], [0], [0], [1], [0, 0, 1, 1], [], []>} : vector<8x16xbf16>, vector<16x128xbf16>, vector<8x128xf32> -> vector<8x128xf32>
      %cst_54 = arith.constant dense<0xFF800000> : vector<128xf32>
      %83 = vector.multi_reduction <maximumf>, %82, %cst_54 [0] : vector<8x128xf32> to vector<128xf32>
      %84 = vector.shape_cast %83 : vector<128xf32> to vector<1x128xf32>
      %85 = vector.broadcast %84 : vector<1x128xf32> to vector<8x128xf32>
      %86 = arith.subf %82, %85 : vector<8x128xf32>
      %87 = math.exp %86 : vector<8x128xf32>
      %cst_55 = arith.constant dense<0.000000e+00> : vector<8x128xf32>
      %88 = tpu.matmul %81, %87, %cst_55 {dimension_numbers = #tpu.dot_dimension_numbers<[1], [0], [0], [1], [0, 0, 1, 1], [], []>} : vector<8x8xf32>, vector<8x128xf32>, vector<8x128xf32> -> vector<8x128xf32>
      %cst_56 = arith.constant dense<0.000000e+00> : vector<8xf32>
      %89 = vector.multi_reduction <add>, %81, %cst_56 [1] : vector<8x8xf32> to vector<8xf32>
      %90 = vector.shape_cast %89 : vector<8xf32> to vector<8x1xf32>
      %cst_57 = arith.constant 0.000000e+00 : f32
      %91 = vector.broadcast %cst_57 : f32 to vector<8x1xf32>
      %92 = arith.cmpf oeq, %90, %91 : vector<8x1xf32>
      %cst_58 = arith.constant 1.000000e-30 : f32
      %93 = vector.broadcast %cst_58 : f32 to vector<8x128xf32>
      %94 = arith.maximumf %88, %93 : vector<8x128xf32>
      %95 = math.log %94 : vector<8x128xf32>
      %96 = vector.broadcast %84 : vector<1x128xf32> to vector<8x128xf32>
      %97 = arith.addf %96, %95 : vector<8x128xf32>
      %cst_59 = arith.constant 0.000000e+00 : f32
      %98 = vector.shape_cast %92 : vector<8x1xi1> to vector<8x1xi1>
      %99 = vector.broadcast %98 : vector<8x1xi1> to vector<8x128xi1>
      %100 = vector.broadcast %cst_59 : f32 to vector<8x128xf32>
      %101 = arith.select %99, %100, %97 : vector<8x128xi1>, vector<8x128xf32>
      %c0_60 = arith.constant 0 : index
      %c0_61 = arith.constant 0 : index
      %102 = vector.load %arg15[%c0_60, %c0_61] : memref<8x128xf32, #tpu.memory_space<vmem>>, vector<8x128xf32>
      tpu.vector_store %arg15[%c0_60, %c0_61], %101 {strides = array<i32>} : memref<8x128xf32, #tpu.memory_space<vmem>>, vector<8x128xf32>,
      %103 = arith.extf %76 : vector<8x16xbf16> to vector<8x16xf32>
      %cst_62 = arith.constant dense<0.000000e+00> : vector<8x16xf32>
      %104 = tpu.matmul %81, %103, %cst_62 {dimension_numbers = #tpu.dot_dimension_numbers<[1], [0], [0], [1], [0, 0, 1, 1], [], []>} : vector<8x8xf32>, vector<8x16xf32>, vector<8x16xf32> -> vector<8x16xf32>
      %cst_63 = arith.constant dense<0.000000e+00> : vector<8xf32>
      %105 = vector.multi_reduction <add>, %104, %cst_63 [1] : vector<8x16xf32> to vector<8xf32>
      %106 = vector.shape_cast %105 : vector<8xf32> to vector<8x1xf32>
      %cst_64 = arith.constant 9.99999968E-21 : f32
      %107 = vector.broadcast %cst_64 : f32 to vector<8x1xf32>
      %108 = arith.addf %106, %107 : vector<8x1xf32>
      %109 = tpu.reciprocal %108 {approx = true} : vector<8x1xf32> -> vector<8x1xf32>
      %110 = vector.broadcast %109 : vector<8x1xf32> to vector<8x16xf32>
      %111 = arith.mulf %104, %110 : vector<8x16xf32>
      %112 = arith.truncf %111 : vector<8x16xf32> to vector<8x16xbf16>
      %cst_65 = arith.constant dense<0.000000e+00> : vector<8x32xf32>
      %113 = tpu.matmul %112, %80, %cst_65 {dimension_numbers = #tpu.dot_dimension_numbers<[1], [0], [0], [1], [0, 0, 1, 1], [], []>} : vector<8x16xbf16>, vector<16x32xbf16>, vector<8x32xf32> -> vector<8x32xf32>
      %c0_66 = arith.constant 0 : index
      %c0_67 = arith.constant 0 : index
      %114 = vector.load %arg16[%c0_66, %c0_67] : memref<8x32xf32, #tpu.memory_space<vmem>>, vector<8x32xf32>
      tpu.vector_store %arg16[%c0_66, %c0_67], %113 {strides = array<i32>} : memref<8x32xf32, #tpu.memory_space<vmem>>, vector<8x32xf32>,
    } else {
    }
    %c0 = arith.constant 0 : index
    %c0_1 = arith.constant 0 : index
    %c0_2 = arith.constant 0 : index
    %3 = vector.load %arg2[%c0, %c0_1, %c0_2] : memref<1x16x128xbf16, #tpu.memory_space<vmem>>, vector<1x16x128xbf16>
    %4 = vector.shape_cast %3 : vector<1x16x128xbf16> to vector<16x128xbf16>
    %c0_3 = arith.constant 0 : index
    %c0_4 = arith.constant 0 : index
    %c0_5 = arith.constant 0 : index
    %5 = vector.load %arg6[%c0_3, %c0_4, %c0_5] : memref<1x8x8xf32, #tpu.memory_space<vmem>>, vector<1x8x8xf32>
    %6 = vector.shape_cast %5 : vector<1x8x8xf32> to vector<8x8xf32>
    %c0_6 = arith.constant 0 : index
    %c0_7 = arith.constant 0 : index
    %c0_8 = arith.constant 0 : index
    %7 = vector.load %arg7[%c0_6, %c0_7, %c0_8] : memref<1x8x8xf32, #tpu.memory_space<vmem>>, vector<1x8x8xf32>
    %8 = vector.shape_cast %7 : vector<1x8x8xf32> to vector<8x8xf32>
    %c0_9 = arith.constant 0 : index
    %c0_10 = arith.constant 0 : index
    %c0_11 = arith.constant 0 : index
    %9 = vector.load %arg8[%c0_9, %c0_10, %c0_11] : memref<1x8x1xf32, #tpu.memory_space<vmem>>, vector<1x8x1xf32>
    %10 = vector.shape_cast %9 : vector<1x8x1xf32> to vector<8x1xf32>
    %c0_12 = arith.constant 0 : index
    %c0_13 = arith.constant 0 : index
    %11 = vector.load %arg15[%c0_12, %c0_13] : memref<8x128xf32, #tpu.memory_space<vmem>>, vector<8x128xf32>
    %cst = arith.constant dense<0.000000e+00> : vector<8x128xf32>
    %12 = tpu.matmul %6, %11, %cst {dimension_numbers = #tpu.dot_dimension_numbers<[1], [0], [0], [1], [0, 0, 1, 1], [], []>} : vector<8x8xf32>, vector<8x128xf32>, vector<8x128xf32> -> vector<8x128xf32>
    %13 = vector.broadcast %10 : vector<8x1xf32> to vector<8x128xf32>
    %14 = arith.mulf %12, %13 : vector<8x128xf32>
    %cst_14 = arith.constant dense<0.000000e+00> : vector<8x128xf32>
    %15 = tpu.matmul %8, %11, %cst_14 {dimension_numbers = #tpu.dot_dimension_numbers<[1], [0], [0], [1], [0, 0, 1, 1], [], []>} : vector<8x8xf32>, vector<8x128xf32>, vector<8x128xf32> -> vector<8x128xf32>
    %16 = vector.broadcast %10 : vector<8x1xf32> to vector<8x128xf32>
    %17 = arith.mulf %15, %16 : vector<8x128xf32>
    %c0_15 = arith.constant 0 : index
    %c0_16 = arith.constant 0 : index
    %18 = vector.load %arg16[%c0_15, %c0_16] : memref<8x32xf32, #tpu.memory_space<vmem>>, vector<8x32xf32>
    %cst_17 = arith.constant dense<0.000000e+00> : vector<8x32xf32>
    %19 = tpu.matmul %6, %18, %cst_17 {dimension_numbers = #tpu.dot_dimension_numbers<[1], [0], [0], [1], [0, 0, 1, 1], [], []>} : vector<8x8xf32>, vector<8x32xf32>, vector<8x32xf32> -> vector<8x32xf32>
    %cst_18 = arith.constant dense<0.000000e+00> : vector<8x32xf32>
    %20 = tpu.matmul %8, %18, %cst_18 {dimension_numbers = #tpu.dot_dimension_numbers<[1], [0], [0], [1], [0, 0, 1, 1], [], []>} : vector<8x8xf32>, vector<8x32xf32>, vector<8x32xf32> -> vector<8x32xf32>
    %21 = arith.mulf %19, %20 : vector<8x32xf32>
    %22 = vector.extract_strided_slice %21 {offsets = [0, 0], sizes = [8, 16], strides = [1, 1]} : vector<8x32xf32> to vector<8x16xf32>
    %23 = vector.extract_strided_slice %21 {offsets = [0, 16], sizes = [8, 16], strides = [1, 1]} : vector<8x32xf32> to vector<8x16xf32>
    %24 = arith.addf %22, %23 : vector<8x16xf32>
    %cst_19 = arith.constant dense<0.000000e+00> : vector<8xf32>
    %25 = vector.multi_reduction <add>, %24, %cst_19 [1] : vector<8x16xf32> to vector<8xf32>
    %26 = vector.shape_cast %25 : vector<8xf32> to vector<8x1xf32>
    %cst_20 = arith.constant 9.99999968E-21 : f32
    %27 = vector.broadcast %cst_20 : f32 to vector<8x1xf32>
    %28 = arith.addf %26, %27 : vector<8x1xf32>
    %29 = tpu.reciprocal %28 {approx = true} : vector<8x1xf32> -> vector<8x1xf32>
    %30 = vector.broadcast %29 : vector<8x1xf32> to vector<8x16xf32>
    %31 = arith.mulf %24, %30 : vector<8x16xf32>
    %32 = arith.truncf %31 : vector<8x16xf32> to vector<8x16xbf16>
    %cst_21 = arith.constant dense<0.000000e+00> : vector<8x128xf32>
    %33 = tpu.matmul %32, %4, %cst_21 {dimension_numbers = #tpu.dot_dimension_numbers<[1], [0], [0], [1], [0, 0, 1, 1], [], []>} : vector<8x16xbf16>, vector<16x128xbf16>, vector<8x128xf32> -> vector<8x128xf32>
    %34 = vector.broadcast %10 : vector<8x1xf32> to vector<8x128xf32>
    %35 = arith.mulf %33, %34 : vector<8x128xf32>
    %36 = tpu.concatenate %14, %17, %35 in 1 : vector<8x128xf32>, vector<8x128xf32>, vector<8x128xf32> -> vector<8x384xf32>
    %37 = arith.truncf %36 : vector<8x384xf32> to vector<8x384xbf16>
    %c0_22 = arith.constant 0 : index
    %c0_23 = arith.constant 0 : index
    %38 = vector.load %arg9[%c0_22, %c0_23] : memref<384x256xbf16, #tpu.memory_space<vmem>>, vector<384x256xbf16>
    %cst_24 = arith.constant dense<0.000000e+00> : vector<8x256xf32>
    %39 = tpu.matmul %37, %38, %cst_24 {dimension_numbers = #tpu.dot_dimension_numbers<[1], [0], [0], [1], [0, 0, 1, 1], [], []>} : vector<8x384xbf16>, vector<384x256xbf16>, vector<8x256xf32> -> vector<8x256xf32>
    %c0_25 = arith.constant 0 : index
    %c0_26 = arith.constant 0 : index
    %40 = vector.load %arg10[%c0_25, %c0_26] : memref<1x256xf32, #tpu.memory_space<vmem>>, vector<1x256xf32>
    %41 = vector.broadcast %40 : vector<1x256xf32> to vector<8x256xf32>
    %42 = arith.addf %39, %41 : vector<8x256xf32>
    %43 = math.tanh %42 : vector<8x256xf32>
    %44 = vector.extract_strided_slice %43 {offsets = [0, 0], sizes = [8, 128], strides = [1, 1]} : vector<8x256xf32> to vector<8x128xf32>
    %45 = arith.truncf %44 : vector<8x128xf32> to vector<8x128xbf16>
    %46 = vector.extract_strided_slice %43 {offsets = [0, 128], sizes = [8, 128], strides = [1, 1]} : vector<8x256xf32> to vector<8x128xf32>
    %47 = arith.truncf %46 : vector<8x128xf32> to vector<8x128xbf16>
    %cst_27 = arith.constant 0.000000e+00 : f32
    %48 = vector.broadcast %cst_27 : f32 to vector<8x512xf32>
    %49 = vector.extract_strided_slice %45 {offsets = [0, 0], sizes = [8, 64], strides = [1, 1]} : vector<8x128xbf16> to vector<8x64xbf16>
    %50 = vector.extract_strided_slice %47 {offsets = [0, 0], sizes = [8, 64], strides = [1, 1]} : vector<8x128xbf16> to vector<8x64xbf16>
    %51 = arith.extf %50 : vector<8x64xbf16> to vector<8x64xf32>
    %c0_28 = arith.constant 0 : index
    %c0_29 = arith.constant 0 : index
    %52 = vector.load %arg11[%c0_28, %c0_29] : memref<128x512xbf16, #tpu.memory_space<vmem>>, vector<64x512xbf16>
    %cst_30 = arith.constant dense<0.000000e+00> : vector<8x512xf32>
    %53 = tpu.matmul %49, %52, %cst_30 {dimension_numbers = #tpu.dot_dimension_numbers<[1], [0], [0], [1], [0, 0, 1, 1], [], []>} : vector<8x64xbf16>, vector<64x512xbf16>, vector<8x512xf32> -> vector<8x512xf32>
    %54 = tpu.concatenate %51, %51, %51, %51, %51, %51, %51, %51 in 1 : vector<8x64xf32>, vector<8x64xf32>, vector<8x64xf32>, vector<8x64xf32>, vector<8x64xf32>, vector<8x64xf32>, vector<8x64xf32>, vector<8x64xf32> -> vector<8x512xf32>
    %55 = arith.mulf %53, %54 : vector<8x512xf32>
    %56 = arith.addf %48, %55 : vector<8x512xf32>
    %57 = vector.extract_strided_slice %45 {offsets = [0, 64], sizes = [8, 64], strides = [1, 1]} : vector<8x128xbf16> to vector<8x64xbf16>
    %58 = vector.extract_strided_slice %47 {offsets = [0, 64], sizes = [8, 64], strides = [1, 1]} : vector<8x128xbf16> to vector<8x64xbf16>
    %59 = arith.extf %58 : vector<8x64xbf16> to vector<8x64xf32>
    %c64 = arith.constant 64 : index
    %c0_31 = arith.constant 0 : index
    %60 = vector.load %arg11[%c64, %c0_31] : memref<128x512xbf16, #tpu.memory_space<vmem>>, vector<64x512xbf16>
    %cst_32 = arith.constant dense<0.000000e+00> : vector<8x512xf32>
    %61 = tpu.matmul %57, %60, %cst_32 {dimension_numbers = #tpu.dot_dimension_numbers<[1], [0], [0], [1], [0, 0, 1, 1], [], []>} : vector<8x64xbf16>, vector<64x512xbf16>, vector<8x512xf32> -> vector<8x512xf32>
    %62 = tpu.concatenate %59, %59, %59, %59, %59, %59, %59, %59 in 1 : vector<8x64xf32>, vector<8x64xf32>, vector<8x64xf32>, vector<8x64xf32>, vector<8x64xf32>, vector<8x64xf32>, vector<8x64xf32>, vector<8x64xf32> -> vector<8x512xf32>
    %63 = arith.mulf %61, %62 : vector<8x512xf32>
    %64 = arith.addf %56, %63 : vector<8x512xf32>
    %c0_33 = arith.constant 0 : index
    %c0_34 = arith.constant 0 : index
    %65 = vector.load %arg12[%c0_33, %c0_34] : memref<512x128xf32, #tpu.memory_space<vmem>>, vector<512x128xf32>
    %cst_35 = arith.constant dense<0.000000e+00> : vector<8x128xf32>
    %66 = tpu.matmul %64, %65, %cst_35 {dimension_numbers = #tpu.dot_dimension_numbers<[1], [0], [0], [1], [0, 0, 1, 1], [], []>} : vector<8x512xf32>, vector<512x128xf32>, vector<8x128xf32> -> vector<8x128xf32>
    %c0_36 = arith.constant 0 : index
    %c0_37 = arith.constant 0 : index
    %67 = vector.load %arg13[%c0_36, %c0_37] : memref<1x128xf32, #tpu.memory_space<vmem>>, vector<1x128xf32>
    %68 = vector.broadcast %67 : vector<1x128xf32> to vector<8x128xf32>
    %69 = arith.addf %66, %68 : vector<8x128xf32>
    %c0_38 = arith.constant 0 : index
    %c0_39 = arith.constant 0 : index
    %c0_40 = arith.constant 0 : index
    %70 = vector.load %arg14[%c0_38, %c0_39, %c0_40] : memref<1x8x128xf32, #tpu.memory_space<vmem>>, vector<1x8x128xf32>
    %71 = vector.shape_cast %70 : vector<1x8x128xf32> to vector<8x128xf32>
    %72 = vector.shape_cast %69 : vector<8x128xf32> to vector<1x8x128xf32>
    tpu.vector_store %arg14[%c0_38, %c0_39, %c0_40], %72 {strides = array<i32>} : memref<1x8x128xf32, #tpu.memory_space<vmem>>, vector<1x8x128xf32>,
    return
  }
  func.func @transform_0(%arg0: i32, %arg1: i32) -> (i32, i32, i32) {
    %c0_i32 = arith.constant 0 : i32
    %c0_i32_0 = arith.constant 0 : i32
    %c0_i32_1 = arith.constant 0 : i32
    return %arg0, %c0_i32, %c0_i32_0 : i32, i32, i32
  }
  func.func @transform_1(%arg0: i32, %arg1: i32) -> (i32, i32, i32) {
    %c0_i32 = arith.constant 0 : i32
    %c0_i32_0 = arith.constant 0 : i32
    %c0_i32_1 = arith.constant 0 : i32
    return %arg0, %c0_i32, %c0_i32_0 : i32, i32, i32
  }
  func.func @transform_2(%arg0: i32, %arg1: i32) -> (i32, i32, i32) {
    %c0_i32 = arith.constant 0 : i32
    %c0_i32_0 = arith.constant 0 : i32
    %c0_i32_1 = arith.constant 0 : i32
    return %arg0, %c0_i32, %c0_i32_0 : i32, i32, i32
  }
  func.func @transform_3(%arg0: i32, %arg1: i32) -> (i32, i32, i32) {
    %c0_i32 = arith.constant 0 : i32
    %c0_i32_0 = arith.constant 0 : i32
    %c0_i32_1 = arith.constant 0 : i32
    return %arg0, %c0_i32, %c0_i32_0 : i32, i32, i32
  }
  func.func @transform_4(%arg0: i32, %arg1: i32) -> (i32, i32, i32) {
    %c0_i32 = arith.constant 0 : i32
    %c0_i32_0 = arith.constant 0 : i32
    return %arg0, %arg1, %c0_i32 : i32, i32, i32
  }
  func.func @transform_5(%arg0: i32, %arg1: i32) -> (i32, i32, i32) {
    %c0_i32 = arith.constant 0 : i32
    %c0_i32_0 = arith.constant 0 : i32
    return %arg0, %arg1, %c0_i32 : i32, i32, i32
  }
  func.func @transform_6(%arg0: i32, %arg1: i32) -> (i32, i32, i32) {
    %c0_i32 = arith.constant 0 : i32
    %c0_i32_0 = arith.constant 0 : i32
    return %arg0, %arg1, %c0_i32 : i32, i32, i32
  }
  func.func @transform_7(%arg0: i32, %arg1: i32) -> (i32, i32) {
    %c0_i32 = arith.constant 0 : i32
    %c0_i32_0 = arith.constant 0 : i32
    %c0_i32_1 = arith.constant 0 : i32
    return %c0_i32, %c0_i32_0 : i32, i32
  }
  func.func @transform_8(%arg0: i32, %arg1: i32) -> (i32, i32) {
    %c0_i32 = arith.constant 0 : i32
    %c0_i32_0 = arith.constant 0 : i32
    %c0_i32_1 = arith.constant 0 : i32
    return %c0_i32, %c0_i32_0 : i32, i32
  }
  func.func @transform_9(%arg0: i32, %arg1: i32) -> (i32, i32) {
    %c0_i32 = arith.constant 0 : i32
    %c0_i32_0 = arith.constant 0 : i32
    %c0_i32_1 = arith.constant 0 : i32
    return %c0_i32, %c0_i32_0 : i32, i32
  }
  func.func @transform_10(%arg0: i32, %arg1: i32) -> (i32, i32) {
    %c0_i32 = arith.constant 0 : i32
    %c0_i32_0 = arith.constant 0 : i32
    %c0_i32_1 = arith.constant 0 : i32
    return %c0_i32, %c0_i32_0 : i32, i32
  }
  func.func @transform_11(%arg0: i32, %arg1: i32) -> (i32, i32) {
    %c0_i32 = arith.constant 0 : i32
    %c0_i32_0 = arith.constant 0 : i32
    %c0_i32_1 = arith.constant 0 : i32
    return %c0_i32, %c0_i32_0 : i32, i32
  }
  func.func @transform_12(%arg0: i32, %arg1: i32) -> (i32, i32, i32) {
    %c0_i32 = arith.constant 0 : i32
    %c0_i32_0 = arith.constant 0 : i32
    return %arg0, %arg1, %c0_i32 : i32, i32, i32
  }
}

</mosaic_0001>

<bundles_post_ra>
// kernel: tpu_custom_call.1
= control target key start
LH: loop header
LB: loop body
LE: loop exit
PB: predicated region body
PF: predicated region fallthrough
CT: control target
= control target key end

     0   :  { %s3646_s0 = inlined_call_operand.vmem [shape: bf16[2,16,128], index: 0, kind: input, shape index: {}]   ;;  %s3647_s1 = inlined_call_operand.vmem [shape: bf16[2,16,32], index: 1, kind: input, shape index: {}]   ;;  %s3648_s2 = inlined_call_operand.vmem [shape: bf16[2,8,16], index: 2, kind: input, shape index: {}]   ;;  %s3649_s3 = inlined_call_operand.vmem [shape: bf16[2,8,8], index: 3, kind: input, shape index: {}]   ;;  %s3650_s4 = inlined_call_operand.vmem [shape: f32[2,16,8], index: 4, kind: input, shape index: {}]   ;;  %s3651_s5 = inlined_call_operand.vmem [shape: f32[2,16,8], index: 5, kind: input, shape index: {}]   ;;  %s3652_s6 = inlined_call_operand.vmem [shape: f32[2,16,1], index: 6, kind: input, shape index: {}]   ;;  %s3653_s7 = inlined_call_operand.hbm [shape: bf16[384,256], index: 7, kind: input, shape index: {}]   ;;  %s3654_s8 = inlined_call_operand.vmem [shape: f32[1,256], index: 8, kind: input, shape index: {}]   ;;  %s3655_s9 = inlined_call_operand.hbm [shape: bf16[128,512], index: 9, kind: input, shape index: {}]   ;;  %s3656_s10 = inlined_call_operand.hbm [shape: f32[512,128], index: 10, kind: input, shape index: {}]   ;;  %s3657_s11 = inlined_call_operand.vmem [shape: f32[1,128], index: 11, kind: input, shape index: {}]   ;;  %s3658_s12 = inlined_call_operand.hbm [shape: f32[2,16,128], index: 12, kind: output, shape index: {}]  }
   0x1   :  { %3676 = sst [smem:[#allocation24_spill]] %s3646_s0 }
   0x2   :  { %3677 = sst [smem:[#allocation25_spill]] %s3653_s7 }
   0x3   :  { %3678 = sst [smem:[#allocation26_spill]] %s3654_s8 }
   0x4   :  { %3679 = sst [smem:[#allocation27_spill]] %s3655_s9 }
   0x5   :  { %3680 = sst [smem:[#allocation28_spill]] %s3657_s11 }
   0x6   :  { %3681 = sst [smem:[#allocation29_spill]] %s3658_s12 }
   0x7   :  { %17 = vsyncpa [#allocation5], 0 }
   0x8   :  { %18 = vsyncpa [#allocation8], 0 }
   0x9   :  { %19 = vsyncpa [#allocation6], 0 }
   0xa   :  { %21 = vsyncpa [#allocation6 + $0x1], 0  ;;  %s3320_s21 = smov 0   ;;  %s3322_s22 = smov 0  }
   0xb   :  { %s3324_s23 = smov 0   ;;  %s3326_s24 = smov 0  }
   0xc   :  { %s3328_s25 = smov 0   ;;  %s3330_s26 = smov 0  }
   0xd   :  { %s3332_s27 = smov 0   ;;  %s3334_s28 = smov 0  }
   0xe LB: > { %3682 = sst [smem:[#allocation14_spill]] %s3210_s21  ;;  %s2467_s29 = sadd.s32 4294967295, %s3238_s28   ;;  %s3238_s28 = sphi %s3334_s28, %s27_s28   ;;  %s3234_s27 = sphi %s3332_s27, %s3718_s27   ;;  %s3230_s26 = sphi %s3330_s26, %s3717_s26   ;;  %s3226_s25 = sphi %s3328_s25, %s3716_s25   ;;  %s3222_s24 = sphi %s3326_s24, %s3715_s24   ;;  %s3218_s23 = sphi %s3324_s23, %s3714_s23   ;;  %s3214_s22 = sphi %s3322_s22, %s3720_s22   ;;  %s3210_s21 = sphi %s3320_s21, %s3719_s21  }
   0xf   : > { %3683 = sst [smem:[#allocation15_spill]] %s3218_s23  ;;  %s2468_s30 = sadd.s32 4294967294, %s3238_s28  }
  0x10   : > { %3684 = sst [smem:[#allocation16_spill]] %s3230_s26  ;;  %s36_s13 = sadd.s32 1, %s3230_s26 }
  0x11   : > { %3685 = sst [smem:[#allocation17_spill]] %s3234_s27  ;;  %s39_s14 = sadd.s32 1, %s3234_s27 }
  0x12   : > { %3686 = sst [smem:[#allocation18_spill]] %s3238_s28  ;;  %p37_p0 = scmp.ge.s32.totalorder %s36_s13, 2 }
  0x13   : > { %s341_s15 = sadd.s32 1, %s3218_s23  ;;  %p351_p1 = scmp.ne.s32.totalorder %s3218_s23, %s3214_s22 }
  0x14   : > { %p352_p2 = scmp.eq.s32.totalorder %s2467_s29, 3  ;;  %s3722_s13 = smov (%p37_p0, %s36_s13), 0 }
  0x15   : > { %3687 = sst [smem:[#allocation19_spill]] %s3722_s13  ;;  %s3724_s14 = smov (!%p37_p0, %s39_s14), %s3234_s27 }
  0x16   : > { %s337_s16 = ssub.s32 %s3230_s26, %s3722_s13  ;;  %p3372_p3 = por %p352_p2, %p351_p1 }
  0x17   : > { %p41_p4 = scmp.ge.s32.totalorder %s3724_s14, 2  ;;  %p357_p5 = scmp.ne.s32.totalorder %s3214_s22, %s3210_s21 }
  0x18   : > { %s3688_s17 = scalar_select %p3372_p3, 1, 0 }
  0x19   : > { %p358_p6 = scmp.eq.s32.totalorder %s2468_s30, 3  ;;  %p2469_p7 = scmp.ge.s32.totalorder %s3238_s28, 1 }
  0x1a   : > { %3689 = sst [smem:[#allocation20_spill]] %s3688_s17  ;;  %s3726_s14 = smov (%p41_p4, %s3724_s14), 0 }
  0x1b   : > { %3690 = sst [smem:[#allocation21_spill]] %s3726_s14  ;;  %p3381_p8 = por %p358_p6, %p357_p5 }
  0x1c   : > { %p365_p9 = scmp.lt.s32.totalorder %s3238_s28, 5  ;;  %s336_s19 = ssub.s32 %s3234_s27, %s3726_s14 }
  0x1d   : > { %s3691_s18 = scalar_select %p3381_p8, 1, 0 }
  0x1e   : > { %s338_s20 = sor.u32 %s337_s16, %s336_s19  ;;  %p3388_p10 = pnand %p2469_p7, %p365_p9 }
  0x1f   : > { %3692 = sst [smem:[#allocation22_spill]] %s3691_s18  ;;  %p339_p11 = scmp.eq.s32.totalorder %s338_s20, 0 }
  0x20   : > { %s3693_s13 = scalar_select %p3388_p10, 1, 0 }
  0x21   : > { %p3392_p12 = scmp.eq.s32.totalorder %s2467_s29, 0  ;;  %p2816_p13 = pneg %p3388_p10 }
  0x22   : > { %s3399_s30 = scalar_select %p339_p11, %s3218_s23, %s341_s15  }
  0x23   : > { %s3694_s26 = scalar_select %p3392_p12, 1, 0 }
  0x24   : > { %3695 = sst [smem:[#allocation23_spill]] %s3399_s30  ;;  %p3403_p0 = pnand %p3392_p12, %p2816_p13 }
  0x25   : > { %s3240_s16 = smov [#allocation7]   ;;  %s3697_s9 = sld [smem:[#allocation27_spill]] }
  0x26   : > { %s393_s19 = sshll.u32 %s3240_s16, 4  ;;  %p3415_p2 = pneg %p3403_p0  ;;  %s394_s19 = int_to_ptr.vmem [resolvable:$true] %s393_s19 }
  0x2b   : > { %s3052_s29 = scalar_lea.hbm %s3697_s9, 4096 }
  0x2c   : > { %p3053_p1 = scmp.ne.s32.totalorder %s3697_s9, %s3052_s29  ;;  %p3059_p6 = scmp.lt.u32.totalorder %s3052_s29, %s3697_s9 }
  0x2e   : > { %p3055_p4 = pnand %p3415_p2, %p3053_p1 }
  0x30   : > { %p3056_p5 = pneg %p3055_p4 }
  0x32   : > { %p3061_p7 = pnand %p3059_p6, %p3056_p5 }
  0x34   : > { %3064 = shalt.err (!%p3061_p7)
}
  0x35   : > { %s3065_s14 = scalar_lea.vmem %s394_s19, 4096  ;;  %p3073_p8 = scmp.lt.s32.totalorder %s394_s19, %s394_s19 }
  0x36   : > { %p3066_p9 = scmp.ne.s32.totalorder %s394_s19, %s3065_s14  ;;  %p3074_p3 = scmp.lt.s32.totalorder %s3065_s14, %s3065_s14 }
  0x38   : > { %p3068_p11 = pnand %p3066_p9, %p3415_p2  ;;  %p3075_p12 = por %p3074_p3, %p3073_p8 }
  0x3a   : > { %p3069_p13 = pneg %p3068_p11 }
  0x3c   : > { %p3076_p10 = pnand %p3075_p12, %p3069_p13 }
  0x3e   : > { %3079 = shalt.err (!%p3076_p10)
}
  0x3f   : > { %s3241_s21 = smov 256   ;;  %s3242_s27 = smov 16  }
  0x40   : > { %2822 = dma.hbm_to_vmem [thread:$0]  (!%p3403_p0), %s3697_s9, 4096, %s394_s19, [#allocation8], %s3241_s21, %s3241_s21, %s3242_s27  }
  0x41   : > { %s3243_s29 = smov [#allocation4]   ;;  %s3699_s7 = sld [smem:[#allocation25_spill]] }
  0x42   : > { %s377_s16 = sshll.u32 %s3243_s29, 4  ;;  %s378_s16 = int_to_ptr.vmem [resolvable:$true] %s377_s16 }
  0x47   : > { %s3080_s12 = scalar_lea.hbm %s3699_s7, 6144 }
  0x48   : > { %p3081_p3 = scmp.ne.s32.totalorder %s3699_s7, %s3080_s12  ;;  %p3087_p12 = scmp.lt.u32.totalorder %s3080_s12, %s3699_s7 }
  0x4a   : > { %p3083_p8 = pnand %p3081_p3, %p3415_p2 }
  0x4c   : > { %p3084_p10 = pneg %p3083_p8 }
  0x4e   : > { %p3089_p1 = pnand %p3087_p12, %p3084_p10 }
  0x50   : > { %3092 = shalt.err (!%p3089_p1)
}
  0x51   : > { %s3093_s19 = scalar_lea.vmem %s378_s16, 6144  ;;  %p3101_p7 = scmp.lt.s32.totalorder %s378_s16, %s378_s16 }
  0x52   : > { %p3094_p4 = scmp.ne.s32.totalorder %s378_s16, %s3093_s19  ;;  %p3102_p9 = scmp.lt.s32.totalorder %s3093_s19, %s3093_s19 }
  0x54   : > { %p3096_p5 = pnand %p3094_p4, %p3415_p2  ;;  %p3103_p11 = por %p3102_p9, %p3101_p7 }
  0x56   : > { %p3097_p6 = pneg %p3096_p5 }
  0x58   : > { %p3104_p13 = pnand %p3103_p11, %p3097_p6 }
  0x5a   : > { %3107 = shalt.err (!%p3104_p13)
}
  0x5b   : > { %s3244_s11 = smov 128   ;;  %s3245_s23 = smov 8  }
  0x5c   : > { %2819 = dma.hbm_to_vmem [thread:$0]  (!%p3403_p0), %s3699_s7, 6144, %s378_s16, [#allocation5], %s3244_s11, %s3244_s11, %s3245_s23  }
  0x5d   : > { %s3246_s28 = smov [#allocation9]   ;;  %s3108_s30 = scalar_lea.hbm %s3656_s10, 8192 }
  0x5e   : > { %s406_s17 = sshll.u32 %s3246_s28, 4  ;;  %p3109_p3 = scmp.ne.s32.totalorder %s3656_s10, %s3108_s30  ;;  %s407_s17 = int_to_ptr.vmem [resolvable:$true] %s406_s17 }
  0x5f   : > { %p3115_p12 = scmp.lt.u32.totalorder %s3108_s30, %s3656_s10 }
  0x60   : > { %p3111_p8 = pnand %p3109_p3, %p3415_p2 }
  0x62   : > { %p3112_p10 = pneg %p3111_p8 }
  0x64   : > { %p3117_p1 = pnand %p3115_p12, %p3112_p10 }
  0x66   : > { %3120 = shalt.err (!%p3117_p1)
}
  0x67   : > { %s3121_s16 = scalar_lea.vmem %s407_s17, 8192  ;;  %p3129_p7 = scmp.lt.s32.totalorder %s407_s17, %s407_s17 }
  0x68   : > { %p3122_p4 = scmp.ne.s32.totalorder %s407_s17, %s3121_s16  ;;  %p3130_p9 = scmp.lt.s32.totalorder %s3121_s16, %s3121_s16 }
  0x6a   : > { %p3124_p5 = pnand %p3122_p4, %p3415_p2  ;;  %p3131_p11 = por %p3130_p9, %p3129_p7 }
  0x6c   : > { %p3125_p6 = pneg %p3124_p5 }
  0x6e   : > { %p3132_p13 = pnand %p3131_p11, %p3125_p6 }
  0x70   : > { %3135 = shalt.err (!%p3132_p13)
}
  0x71   : > { %2825 = dma.hbm_to_vmem [thread:$0]  (!%p3403_p0), %s3656_s10, 8192, %s407_s17, [#allocation8], %s3244_s11, %s3244_s11, %s3245_s23  }
  0x72   : > { %p3700_p3 = scmp.ne.s32.totalorder %s3693_s13, 0 }
  0x73   : > { %p3701_p8 = scmp.ne.s32.totalorder (!%p3700_p3), %s3694_s26, 0 }
  0x74   : > { %488 = sbr.rel (%p3700_p3) target bundleno = 2255 (0x8cf), region = 68 }
  0x7b   : > { %3197 = dma.done.wait (%p3701_p8), [#allocation5], 6144  }
  0x7c   : > { %3199 = vsyncadd (%p3701_p8), [#allocation5], 4294961152 }
  0x7d   : > { %3201 = dma.done.wait (%p3701_p8), [#allocation8], 12288  }
  0x7e   : > { %3203 = vsyncadd (%p3701_p8), [#allocation8], 4294955008  ;;  %s3675_s13 = sand.u32 1, %s3214_s22   ;;  %p575_p0 = scmp.lt.s32.totalorder %s3226_s25, 1 }
  0x7f   : > { %s3481_s18 = sshll.u32 %s3675_s13, 3  ;;  %p595_p2 = scmp.lt.s32.totalorder %s3222_s24, 1 }
  0x80   : > { %s576_s15 = scalar_select %p575_p0, %s3226_s25, 1 }
  0x81   : > { %s596_s11 = scalar_select %p595_p2, %s3222_s24, 1 }
  0x82   : > { %s2594_s23 = sshll.u32 %s576_s15, 3  ;;  %s2483_s28 = sshll.u32 %s576_s15, 2 }
  0x83   : > { %s3702_s0 = sld [smem:[#allocation24_spill]]  ;;  %s3494_s20 = scalar_lea.vmem %s3647_s1, %s2594_s23 }
  0x84   : > { %s588_s19 = scalar_lea.vmem %s3648_s2, %s2483_s28  ;;  %s592_s12 = scalar_lea.vmem %s3649_s3, %s2483_s28 }
  0x85   : > { %s2485_s13 = sshll.u32 %s576_s15, 1  ;;  %s574_s28 = scalar_lea.vmem [#allocation10], %s3481_s18 }
  0x86   : > { %s598_s7 = sadd.s32 %s2485_s13, %s596_s11  ;;  %p2491_p10 = scmp.ne.s32.totalorder %s3222_s24, 0 }
  0x87   : > { %s3502_s9 = sshll.u32 %s598_s7, 3  ;;  %v3247_v1 = vmov (!%p2491_p10), 0.0   ;;  %v624_v2 = vld [vmem:[%s588_s19] sm:$0xf] (!%p2491_p10)  ;;  %vm3248_vm0 = vmmov (!%p2491_p10), 0   ;;  %vm688_vm1 = vcmask (!%p2491_p10), 64512  }
  0x88   : > { %s608_s29 = scalar_lea.vmem %s3651_s5, %s3502_s9  ;;  %s616_s16 = scalar_lea.vmem %s3652_s6, %s3502_s9  ;;  %2684 = vmatprep.subr.bf16.mxu0 (!%p2491_p10), %v3247_v1  ;;  %2695 = vmatprep.subr.mxu1 (!%p2491_p10), %v3247_v1  ;;  %v625_v3 = vld [vmem:[%s592_s12] sm:$0xf] (!%p2491_p10)  ;;  %v774_v4 = vunpack.c.l.bf16 (!%p2491_p10), %v624_v2  ;;  %vm635_vm2 = vcmask (!%p2491_p10), 130048   ;;  %vm901_vm4 = vcmask (!%p2491_p10), 261120  }
  0x89   : > { %s3489_s21 = scalar_lea.vmem %s3702_s0, %s2594_s23  ;;  %s600_s23 = scalar_lea.vmem %s3650_s4, %s3502_s9  ;;  %2697 = vmatprep.mubr.msk.f32.mxu1 (!%p2491_p10), %vm3248_vm0, %v3247_v1  ;;  %v628_v5 = vunpack.c.l.bf16 (!%p2491_p10), %v625_v3  ;;  %2686 = vmatprep.mubr.msk.bf16.mxu0 (!%p2491_p10), %vm3248_vm0, %v3247_v1  ;;  %v2916_v23 = vld [vmem:[%s3494_s20] sm:$0xff] (!%p2491_p10)  }
  0x8a   : > { %621 = sbr.rel (%p2491_p10) target bundleno = 726 (0x2d6), region = 84  ;;  %v2915_v0 = vld [vmem:[%s3489_s21] sm:$0xff] (!%p2491_p10)   ;;  %2696 = vmatpush3.msra.mxu1 (!%p2491_p10), %v774_v4 }
  0x8b   : > { %2685 = vmatpush3.bf16.msra.mxu0 (!%p2491_p10), %v2915_v0  ;;  %2698 = vmatmul.mubr.msk.f32.vlgmr.msra.gmra.mrb[0].mxu1 (!%p2491_p10), %vm688_vm1, %v628_v5  ;;  %v762_v15 = vsel (!%p2491_p10), %vm688_vm1, %v628_v5, 0.0 }
  0x8c   : > { %2690 = vmatprep.subr.mxu0 (!%p2491_p10), %v3247_v1  ;;  %2700 = vmatprep.subr.bf16.mxu1 (!%p2491_p10), %v3247_v1 }
  0x8d   : > { %2702 = vmatprep.mubr.msk.bf16.mxu1 (!%p2491_p10), %vm3248_vm0, %v3247_v1  ;;  %2701 = vmatpush3.bf16.msra.mxu1 (!%p2491_p10), %v2916_v23 }
  0x8e   : > { %2687 = vmatmul.mubr.msk.bf16.vlgmr.msra.gmra.mrb[0].mxu0 (!%p2491_p10), %vm635_vm2, %v624_v2 }
  0x8f   : > { %2692 = vmatprep.mubr.msk.f32.mxu0 (!%p2491_p10), %vm3248_vm0, %v3247_v1 }
 0x15e   : > { %v841_v6 = vpop.f32.mrb[0].mxu1 }
 0x15f   : > { %v2699_v8 = vpop.f32.mrb[1].mxu1  ;;  %v845_v9 = vsel %vm635_vm2, %v841_v6, 0.0 }
 0x160   : > { %846 = vadd.xlane.f32.xlu0 %v845_v9 }
 0x161   : > { %v673_v7 = vpop.f32.mrb[0].mxu0 }
 0x162   : > { %v679_v10 = vrot.slane %v673_v7, 4  ;;  %v2688_v11 = vpop.f32.mrb[1].mxu0 }
 0x163   : > { %v676_v12 = vpop.f32.mrb[2].mxu0 }
 0x164   : > { %v680_v13 = vmax.f32 %v673_v7, %v679_v10  ;;  %v2689_v14 = vpop.f32.mrb[3].mxu0  ;;  %763 = vadd.xlane.f32.xlu0 %v762_v15 }
 0x166   : > { %v681_v16 = vrot.slane %v680_v13, 2 }
 0x168   : > { %v682_v17 = vmax.f32 %v680_v13, %v681_v16 }
 0x16a   : > { %v683_v18 = vrot.slane %v682_v17, 1 }
 0x16c   : > { %v684_v19 = vmax.f32 %v682_v17, %v683_v18 }
 0x16e   : > { %v685_v20 = vsub.f32 %v673_v7, %v684_v19 }
 0x170   : > { %v686_v21 = vmul.f32 1.442695, %v685_v20 }
 0x172   : > { %2917 = vpow2.f32 %v686_v21 }
 0x17c   : > { %v2918_v22 = vpop.eup %2917 }
 0x17d   : > { %2691 = vmatpush3.msra.mxu0 %v2918_v22 }
 0x17e   : > { %2693 = vmatmul.mubr.msk.f32.vlgmr.msra.gmra.mrb[4].mxu0 %vm688_vm1, %v628_v5 }
 0x1ed   : > { %v847_v24 = vpop.xlane.xlu0 %846 }
 0x1ee   : > { %v848_v25 = vadd.f32 1e-20, %v847_v24 }
 0x1f0   : > { %2919 = vrcp.f32 %v848_v25 }
 0x1f1   : > { %v764_v32 = vpop.xlane.xlu0 %763 }
 0x1f2   : > { %vm765_vm3 = vcmp.eq.f32.partialorder %v764_v32, 0.0 }
 0x1fa   : > { %v2920_v26 = vpop.eup %2919 }
 0x1fb   : > { %v850_v27 = vmul.f32 %v2920_v26, %v841_v6 }
 0x1fd   : > { %v851_v28 = vpack.c.bf16 %v850_v27, %v850_v27 }
 0x1ff   : > { %2703 = vmatmul.mubr.msk.bf16.vlgmr.msra.gmra.mrb[4].mxu1 %vm635_vm2, %v851_v28 }
 0x251   : > { %v758_v29 = vpop.f32.mrb[4].mxu0 }
 0x252   : > { %v766_v30 = vmax.f32 %v758_v29, 1e-30  ;;  %v2694_v31 = vpop.f32.mrb[5].mxu0 }
 0x254   : > { %2921 = vlog2.f32 %v766_v30 }
 0x25e   : > { %v2922_v33 = vpop.eup %2921 }
 0x25f   : > { %v768_v34 = vmul.f32 0.6931472, %v2922_v33 }
 0x261   : > { %v769_v35 = vadd.f32 %v768_v34, %v684_v19 }
 0x263   : > { %v772_v36 = vsel %vm765_vm3, 0.0, %v769_v35 }
 0x264   : > { %773 = vst [vmem:[#allocation2] sm:$0xff] %v772_v36 }
 0x2d2   : > { %v895_v37 = vpop.f32.mrb[4].mxu1 }
 0x2d3   : > { %902 = vst.msk [vmem:[#allocation3] sm:$0xff] %vm901_vm4, %v895_v37  ;;  %v2704_v38 = vpop.f32.mrb[5].mxu1 }
 0x2d4   : > { %v898_v39 = vpop.f32.mrb[6].mxu1 }
 0x2d5   : > { %v2705_v40 = vpop.f32.mrb[7].mxu1 }
 0x2d6 PF: > { %v908_v41 = vld [vmem:[#allocation2] sm:$0xff]  ;;  %vm909_vm5 = vcmask 64512   ;;  %v3249_v43 = vmov 0.0   ;;  %vm3250_vm6 = vmmov 0   ;;  %v3251_v44 = vmov 0   ;;  %s3252_s9 = smov 112  }
 0x2d7   : > { %v905_v42 = vld [vmem:[%s600_s23] sm:$0xff]  ;;  %2706 = vmatprep.subr.mxu0 %v3249_v43  ;;  %2708 = vmatprep.mubr.msk.f32.mxu0 %vm3250_vm6, %v3249_v43  ;;  %v2925_v46 = vld [vmem:[#allocation4 + $0x4] ss:$8 sps:$4 sm:$0xff]   ;;  %v2927_v47 = vld [vmem:[#allocation4] ss:$8 sps:$4 sm:$0xff]   ;;  %vm1210_vm7 = vcmask 130048  }
 0x2d8   : > { %2707 = vmatpush3.msra.mxu0 %v908_v41  ;;  %2923 = vset.pattern.permute.xlu1 %v3251_v44  ;;  %v907_v45 = vld [vmem:[%s616_s16] sm:$0xff]  ;;  %v2931_v52 = vld [vmem:[#allocation4 + $0x24] ss:$8 sps:$4 sm:$0xff]   ;;  %v2933_v53 = vld [vmem:[#allocation4 + $0x20] ss:$8 sps:$4 sm:$0xff]   ;;  %s3703_s8 = sld [smem:[#allocation26_spill]] }
 0x2d9   : > { %2709 = vmatmul.mubr.msk.f32.vlgmr.msra.gmra.mrb[0].mxu0 %vm909_vm5, %v905_v42  ;;  %2711 = vmatprep.subr.mxu0 %v3249_v43  ;;  %v906_v48 = vld [vmem:[%s608_s29] sm:$0xff]  ;;  %v2937_v56 = vld [vmem:[#allocation4 + $0x44] ss:$8 sps:$4 sm:$0xff]   ;;  %v2939_v57 = vld [vmem:[#allocation4 + $0x40] ss:$8 sps:$4 sm:$0xff]   ;;  %vm1754_vm8 = vcmask 523264  }
 0x2da   : > { %2712 = vmatpush3.msra.mxu0 %v908_v41  ;;  %2713 = vmatprep.mubr.msk.f32.mxu0 %vm3250_vm6, %v3249_v43  ;;  %v1063_v49 = vld [vmem:[#allocation3] sm:$0xff]  ;;  %v2943_v60 = vld [vmem:[#allocation4 + $0x64] ss:$8 sps:$4 sm:$0xff]   ;;  %v2945_v61 = vld [vmem:[#allocation4 + $0x60] ss:$8 sps:$4 sm:$0xff]   ;;  %s3253_s12 = smov 64  }
 0x2db   : > { %2716 = vmatprep.subr.mxu0 %v3249_v43  ;;  %985 = vperm.xlu1 %2923, %v907_v45   ;;  %v2928_v50 = vld [vmem:[#allocation4 + $0x14] ss:$8 sps:$4 sm:$0xff]   ;;  %v2930_v51 = vld [vmem:[#allocation4 + $0x10] ss:$8 sps:$4 sm:$0xff]   ;;  %v2949_v0 = vld [vmem:[#allocation4 + $0x84] ss:$8 sps:$4 sm:$0xff]  }
 0x2dc   : > { %1571 = vmatprep.subr.bf16.mxu1 %v2925_v46  ;;  %2924 = vset.pattern.permute.xlu0 %v3251_v44  ;;  %v2934_v54 = vld [vmem:[#allocation4 + $0x34] ss:$8 sps:$4 sm:$0xff]   ;;  %v2936_v55 = vld [vmem:[#allocation4 + $0x30] ss:$8 sps:$4 sm:$0xff]   ;;  %v2951_v1 = vld [vmem:[#allocation4 + $0x80] ss:$8 sps:$4 sm:$0xff]  }
 0x2dd   : > { %2714 = vmatmul.mubr.msk.f32.vlgmr.msra.gmra.mrb[2].mxu0 %vm909_vm5, %v906_v48  ;;  %1572 = vmatpush1.bf16.msra.mxu1 %v2927_v47  ;;  %v2940_v58 = vld [vmem:[#allocation4 + $0x54] ss:$8 sps:$4 sm:$0xff]   ;;  %v2942_v59 = vld [vmem:[#allocation4 + $0x50] ss:$8 sps:$4 sm:$0xff]   ;;  %v2955_v4 = vld [vmem:[#allocation4 + $0xa4] ss:$8 sps:$4 sm:$0xff]  }
 0x2de   : > { %2717 = vmatpush3.msra.mxu0 %v1063_v49  ;;  %2718 = vmatprep.mubr.msk.f32.mxu0 %vm3250_vm6, %v3249_v43  ;;  %v2946_v62 = vld [vmem:[#allocation4 + $0x74] ss:$8 sps:$4 sm:$0xff]   ;;  %v2948_v63 = vld [vmem:[#allocation4 + $0x70] ss:$8 sps:$4 sm:$0xff]   ;;  %v2957_v5 = vld [vmem:[#allocation4 + $0xa0] ss:$8 sps:$4 sm:$0xff]  }
 0x2df   : > { %2721 = vmatprep.subr.mxu0 %v3249_v43  ;;  %1573 = vmatprep.subr.bf16.mxu1 %v2928_v50  ;;  %v2952_v2 = vld [vmem:[#allocation4 + $0x94] ss:$8 sps:$4 sm:$0xff]   ;;  %v2954_v3 = vld [vmem:[#allocation4 + $0x90] ss:$8 sps:$4 sm:$0xff]   ;;  %v2961_v8 = vld [vmem:[#allocation4 + $0xc4] ss:$8 sps:$4 sm:$0xff]  }
 0x2e0   : > { %v2958_v6 = vld [vmem:[#allocation4 + $0xb4] ss:$8 sps:$4 sm:$0xff]   ;;  %v2960_v7 = vld [vmem:[#allocation4 + $0xb0] ss:$8 sps:$4 sm:$0xff]   ;;  %v2963_v9 = vld [vmem:[#allocation4 + $0xc0] ss:$8 sps:$4 sm:$0xff]  }
 0x2e1   : > { %2719 = vmatmul.mubr.msk.f32.vlgmr.msra.gmra.mrb[4].mxu0 %vm909_vm5, %v905_v42  ;;  %1574 = vmatpush1.bf16.msra.mxu1 %v2930_v51  ;;  %v2964_v10 = vld [vmem:[#allocation4 + $0xd4] ss:$8 sps:$4 sm:$0xff]   ;;  %v2966_v11 = vld [vmem:[#allocation4 + $0xd0] ss:$8 sps:$4 sm:$0xff]   ;;  %v2967_v12 = vld [vmem:[#allocation4 + $0xe4] ss:$8 sps:$4 sm:$0xff]  }
 0x2e2   : > { %2722 = vmatpush3.msra.mxu0 %v1063_v49  ;;  %2723 = vmatprep.mubr.msk.f32.mxu0 %vm3250_vm6, %v3249_v43  ;;  %v2969_v13 = vld [vmem:[#allocation4 + $0xe0] ss:$8 sps:$4 sm:$0xff]   ;;  %v2970_v14 = vld [vmem:[#allocation4 + $0xf4] ss:$8 sps:$4 sm:$0xff]   ;;  %v2972_v15 = vld [vmem:[#allocation4 + $0xf0] ss:$8 sps:$4 sm:$0xff]  }
 0x2e3   : > { %1575 = vmatprep.subr.bf16.mxu1 %v2931_v52  ;;  %2726 = vmatprep.subr.bf16.mxu0 %v3249_v43  ;;  %v2973_v33 = vld [vmem:[%s3489_s21] sm:$0xff]   ;;  %v2974_v34 = vld [vmem:[#allocation4 + $0x100] ss:$8 sps:$4 sm:$0xff]   ;;  %v2976_v35 = vld [vmem:[#allocation4 + $0x104] ss:$8 sps:$4 sm:$0xff]   ;;  %s2590_s17 = sshll.u32 %s3226_s25, 1 }
 0x2e4   : > { %v2979_v36 = vld [vmem:[#allocation4 + $0x114] ss:$8 sps:$4 sm:$0xff]   ;;  %v2977_v37 = vld [vmem:[#allocation4 + $0x110] ss:$8 sps:$4 sm:$0xff]   ;;  %v2982_v38 = vld [vmem:[#allocation4 + $0x124] ss:$8 sps:$4 sm:$0xff]   ;;  %s2270_s23 = sadd.s32 %s3222_s24, %s2590_s17 }
 0x2e5   : > { %2724 = vmatmul.mubr.msk.f32.vlgmr.msra.gmra.mrb[6].mxu0 %vm909_vm5, %v906_v48  ;;  %1576 = vmatpush1.bf16.msra.mxu1 %v2933_v53  ;;  %v2980_v39 = vld [vmem:[#allocation4 + $0x120] ss:$8 sps:$4 sm:$0xff]   ;;  %v2985_v40 = vld [vmem:[#allocation4 + $0x134] ss:$8 sps:$4 sm:$0xff]   ;;  %v2983_v41 = vld [vmem:[#allocation4 + $0x130] ss:$8 sps:$4 sm:$0xff]  }
 0x2e6   : > { %1577 = vmatprep.subr.bf16.mxu1 %v2934_v54  ;;  %2728 = vmatprep.mubr.msk.bf16.mxu0 %vm3250_vm6, %v3249_v43  ;;  %v2988_v42 = vld [vmem:[#allocation4 + $0x144] ss:$8 sps:$4 sm:$0xff]   ;;  %v2986_v43 = vld [vmem:[#allocation4 + $0x140] ss:$8 sps:$4 sm:$0xff]   ;;  %v2991_v45 = vld [vmem:[#allocation4 + $0x154] ss:$8 sps:$4 sm:$0xff]  }
 0x2e7   : > { %2727 = vmatpush3.bf16.msra.mxu0 %v2973_v33  ;;  %v2989_v46 = vld [vmem:[#allocation4 + $0x150] ss:$8 sps:$4 sm:$0xff]   ;;  %v2994_v47 = vld [vmem:[#allocation4 + $0x164] ss:$8 sps:$4 sm:$0xff]   ;;  %v2992_v48 = vld [vmem:[#allocation4 + $0x160] ss:$8 sps:$4 sm:$0xff]  }
 0x2e8   : > { %v2997_v54 = vld [vmem:[#allocation4 + $0x174] ss:$8 sps:$4 sm:$0xff]   ;;  %v3022_v33 = vld [vmem:[#allocation7 + $0x80] ss:$16 sps:$4 sm:$0xff]   ;;  %s3704_s26 = sld [smem:[#allocation20_spill]]  ;;  %s3705_s29 = sld [smem:[#allocation28_spill]] }
 0x2e9   : > { %1578 = vmatpush1.bf16.msra.mxu1 %v2936_v55  ;;  %v2995_v55 = vld [vmem:[#allocation4 + $0x170] ss:$8 sps:$4 sm:$0xff]   ;;  %s2591_s14 = sshll.u32 %s2270_s23, 7  ;;  %s2274_s16 = sshll.u32 %s574_s28, 4  ;;  %s3591_s16 = int_to_ptr.vmem [resolvable:$true] %s2274_s16 }
 0x2ea   : > { %1579 = vmatprep.subr.bf16.mxu1 %v2937_v56  ;;  %v2998_v56 = vld [vmem:[#allocation7] ss:$16 sps:$4 sm:$0xff]   ;;  %s3706_s13 = sld [smem:[#allocation29_spill]]  ;;  %s3707_s24 = sand.u32 1, %s3214_s22  }
 0x2eb   : > { %s2259_s25 = scalar_lea.sflag [#allocation6], %s3707_s24  ;;  %s3136_s11 = scalar_lea.vmem %s3591_s16, 128 }
 0x2ec   : > { %p3137_p12 = scmp.ne.s32.totalorder %s3591_s16, %s3136_s11  ;;  %s3254_s20 = smov [#allocation10]  }
 0x2ed   : > { %1580 = vmatpush1.bf16.msra.mxu1 %v2939_v57  ;;  %v3000_v57 = vld [vmem:[#allocation7 + $0x4] ss:$16 sps:$4 sm:$0xff]  }
 0x2ee   : > { %1581 = vmatprep.subr.bf16.mxu1 %v2940_v58  ;;  %1758 = vmatprep.subr.bf16.mxu0 %v3000_v57  ;;  %v2099_v57 = vld [vmem:[#allocation9 + $0x1a8] sm:$0xff]  ;;  %p3708_p1 = scmp.ne.s32.totalorder %s3704_s26, 0 }
 0x2f0   : > { %s3589_s15 = scalar_lea.hbm %s3706_s13, %s2591_s14  ;;  %p3138_p4 = pnand %p3137_p12, %p3708_p1 }
 0x2f1   : > { %1582 = vmatpush1.bf16.msra.mxu1 %v2942_v59 }
 0x2f2   : > { %1583 = vmatprep.subr.bf16.mxu1 %v2943_v60  ;;  %p3139_p5 = pneg %p3138_p4 }
 0x2f5   : > { %1584 = vmatpush1.bf16.msra.mxu1 %v2945_v61 }
 0x2f6   : > { %1585 = vmatprep.subr.bf16.mxu1 %v2946_v62 }
 0x2f9   : > { %1586 = vmatpush1.bf16.msra.mxu1 %v2948_v63 }
 0x2fa   : > { %1587 = vmatprep.subr.bf16.mxu1 %v2949_v0  ;;  %v3003_v0 = vld [vmem:[#allocation7 + $0x24] ss:$16 sps:$4 sm:$0xff]  }
 0x2fd   : > { %1588 = vmatpush1.bf16.msra.mxu1 %v2951_v1  ;;  %v3001_v1 = vld [vmem:[#allocation7 + $0x20] ss:$16 sps:$4 sm:$0xff]  }
 0x2fe   : > { %1589 = vmatprep.subr.bf16.mxu1 %v2952_v2  ;;  %v3006_v2 = vld [vmem:[#allocation7 + $0x44] ss:$16 sps:$4 sm:$0xff]  }
 0x301   : > { %1590 = vmatpush1.bf16.msra.mxu1 %v2954_v3  ;;  %v3004_v3 = vld [vmem:[#allocation7 + $0x40] ss:$16 sps:$4 sm:$0xff]  }
 0x302   : > { %1591 = vmatprep.subr.bf16.mxu1 %v2955_v4  ;;  %v3009_v4 = vld [vmem:[#allocation7 + $0x64] ss:$16 sps:$4 sm:$0xff]  }
 0x305   : > { %1592 = vmatpush1.bf16.msra.mxu1 %v2957_v5  ;;  %v3007_v5 = vld [vmem:[#allocation7 + $0x60] ss:$16 sps:$4 sm:$0xff]  }
 0x306   : > { %1593 = vmatprep.subr.bf16.mxu1 %v2958_v6  ;;  %v3012_v6 = vld [vmem:[#allocation7 + $0xc] ss:$16 sps:$4 sm:$0xff]  }
 0x309   : > { %1594 = vmatpush1.bf16.msra.mxu1 %v2960_v7  ;;  %v1321_v7 = vlaneseq }
 0x30a   : > { %1595 = vmatprep.subr.bf16.mxu1 %v2961_v8 }
 0x30b   : > { %v1322_v8 = vshrl.u32 %v1321_v7, 7  ;;  %v2046_v7 = vld [vmem:[#allocation9] sm:$0xff] }
 0x30d   : > { %1596 = vmatpush1.bf16.msra.mxu1 %v2963_v9  ;;  %v1323_v9 = vsub.s32 0, %v1322_v8 }
 0x30e   : > { %1597 = vmatprep.subr.bf16.mxu1 %v2964_v10  ;;  %v1319_v10 = vld [vmem:[%s3703_s8] sm:$0x3] }
 0x311   : > { %1598 = vmatpush1.bf16.msra.mxu1 %v2966_v11  ;;  %v1327_v11 = vsub.s32 1, %v1322_v8  ;;  %v2047_v8 = vld [vmem:[#allocation9 + $0x8] sm:$0xff] }
 0x312   : > { %1599 = vmatprep.subr.bf16.mxu1 %v2967_v12  ;;  %v1324_v12 = vrot.slane %v1319_v10, %v1323_v9  ;;  %v2064_v9 = vld [vmem:[#allocation9 + $0x90] sm:$0xff] }
 0x315   : > { %1600 = vmatpush1.bf16.msra.mxu1 %v2969_v13  ;;  %v1328_v13 = vrot.slane %v1319_v10, %v1327_v11  ;;  %v2734_v10 = vpack.c.bf16 %v2047_v8, %v2046_v7  ;;  %v2107_v7 = vld [vmem:[#allocation9 + $0x1e8] sm:$0xff] }
 0x316   : > { %1601 = vmatprep.subr.bf16.mxu1 %v2970_v14 }
 0x319   : > { %1602 = vmatpush1.bf16.msra.mxu1 %v2972_v15 }
 0x31a   : > { %1612 = vmatprep.subr.bf16.mxu1 %v2976_v35  ;;  %v3025_v35 = vld [vmem:[#allocation7 + $0xa0] ss:$16 sps:$4 sm:$0xff]  }
 0x35a   : > { %v3552_v17 = vpop.permute.xlu1 %985 }
 0x3ac   : > { %v979_v16 = vpop.f32.mrb[0].mxu0 }
 0x3ad   : > { %v2710_v18 = vpop.f32.mrb[1].mxu0  ;;  %v988_v19 = vmul.f32 %v3552_v17, %v979_v16 }
 0x3af   : > { %v1268_v25 = vpack.c.bf16 %v988_v19, %v988_v19 }
 0x3b0   : > { %v1058_v20 = vpop.f32.mrb[2].mxu0 }
 0x3b1   : > { %v2715_v21 = vpop.f32.mrb[3].mxu0  ;;  %v1062_v22 = vmul.f32 %v1058_v20, %v3552_v17 }
 0x3b2   : > { %v3010_v21 = vld [vmem:[#allocation7 + $0x8] ss:$16 sps:$4 sm:$0xff]  }
 0x3b3   : > { %v1269_v23 = vpack.c.bf16 %v1062_v22, %v1062_v22 }
 0x3b4   : > { %v1130_v24 = vpop.f32.mrb[4].mxu0 }
 0x3b5   : > { %v2720_v26 = vpop.f32.mrb[5].mxu0  ;;  %1603 = vmatprep.mubr.bf16.mxu1 %v1269_v23 }
 0x3b6   : > { %1604 = vmatmul.mubr.bf16.vlgmr.msra.gmra.mrb[0].mxu1 %v1268_v25  ;;  %v3013_v26 = vld [vmem:[#allocation7 + $0x28] ss:$16 sps:$4 sm:$0xff]  }
 0x3b7   : > { %1644 = vmatprep.mubr.bf16.mxu1 %v3251_v44  ;;  %1613 = vmatpush1.bf16.msra.mxu1 %v2974_v34  ;;  %v3027_v34 = vld [vmem:[#allocation7 + $0xa4] ss:$16 sps:$4 sm:$0xff]  }
 0x3b8   : > { %v1200_v27 = vpop.f32.mrb[6].mxu0  ;;  %1614 = vmatprep.subr.bf16.mxu1 %v2979_v36  ;;  %v3030_v36 = vld [vmem:[#allocation7 + $0xc4] ss:$16 sps:$4 sm:$0xff]  }
 0x3b9   : > { %v1204_v28 = vmul.f32 %v1200_v27, %v1130_v24  ;;  %v2725_v29 = vpop.f32.mrb[7].mxu0  ;;  %v3015_v24 = vld [vmem:[#allocation7 + $0x2c] ss:$16 sps:$4 sm:$0xff]  }
 0x3ba   : > { %v3016_v29 = vld [vmem:[#allocation7 + $0x48] ss:$16 sps:$4 sm:$0xff]  }
 0x3bb   : > { %1206 = vrot.lane.b32.xlu0 %v1204_v28, %s3252_s9  ;;  %1615 = vmatpush1.bf16.msra.mxu1 %v2977_v37  ;;  %v3028_v37 = vld [vmem:[#allocation7 + $0xc0] ss:$16 sps:$4 sm:$0xff]   ;;  %s3140_s9 = sshll.u32 %s3254_s20, 4  ;;  %s3141_s9 = int_to_ptr.vmem [resolvable:$false] %s3140_s9 }
 0x3bc   : > { %1616 = vmatprep.subr.bf16.mxu1 %v2982_v38  ;;  %v3033_v38 = vld [vmem:[#allocation7 + $0xe4] ss:$16 sps:$4 sm:$0xff]   ;;  %s3142_s21 = scalar_lea.vmem %s3141_s9, 256  ;;  %p3143_p6 = scmp.lt.s32.totalorder %s3591_s16, %s3141_s9 }
 0x3bd   : > { %p3144_p7 = scmp.lt.s32.totalorder %s3142_s21, %s3136_s11 }
 0x3bf   : > { %1617 = vmatpush1.bf16.msra.mxu1 %v2980_v39  ;;  %v3031_v39 = vld [vmem:[#allocation7 + $0xe0] ss:$16 sps:$4 sm:$0xff]   ;;  %p3145_p9 = por %p3144_p7, %p3143_p6 }
 0x3c0   : > { %1618 = vmatprep.subr.bf16.mxu1 %v2985_v40  ;;  %v3036_v40 = vld [vmem:[#allocation7 + $0x8c] ss:$16 sps:$4 sm:$0xff]  }
 0x3c1   : > { %p3146_p11 = pnand %p3145_p9, %p3139_p5 }
 0x3c3   : > { %1619 = vmatpush1.bf16.msra.mxu1 %v2983_v41  ;;  %v2094_v41 = vld [vmem:[#allocation9 + $0x180] sm:$0xff] }
 0x3c4   : > { %1620 = vmatprep.subr.bf16.mxu1 %v2988_v42  ;;  %v2095_v42 = vld [vmem:[#allocation9 + $0x188] sm:$0xff] }
 0x3c7   : > { %1621 = vmatpush1.bf16.msra.mxu1 %v2986_v43  ;;  %v2764_v43 = vpack.c.bf16 %v2095_v42, %v2094_v41 }
 0x3c8   : > { %1622 = vmatprep.subr.bf16.mxu1 %v2991_v45  ;;  %v2078_v45 = vld [vmem:[#allocation9 + $0x100] sm:$0xff] }
 0x3cb   : > { %1623 = vmatpush1.bf16.msra.mxu1 %v2989_v46  ;;  %v2079_v46 = vld [vmem:[#allocation9 + $0x108] sm:$0xff] }
 0x3cc   : > { %1624 = vmatprep.subr.bf16.mxu1 %v2994_v47  ;;  %v2766_v47 = vpack.c.bf16 %v2079_v46, %v2078_v45  ;;  %v2059_v45 = vld [vmem:[#allocation9 + $0x68] sm:$0xff] }
 0x3cf   : > { %1625 = vmatpush1.bf16.msra.mxu1 %v2992_v48  ;;  %v2096_v48 = vld [vmem:[#allocation9 + $0x190] sm:$0xff] }
 0x3d0   : > { %1626 = vmatprep.subr.bf16.mxu1 %v2997_v54  ;;  %v2098_v54 = vld [vmem:[#allocation9 + $0x1a0] sm:$0xff] }
 0x3d3   : > { %1627 = vmatpush1.bf16.msra.mxu1 %v2995_v55  ;;  %v3039_v55 = vld [vmem:[#allocation7 + $0xac] ss:$16 sps:$4 sm:$0xff]  }
 0x3d4   : > { %2765 = vmatprep.subr.bf16.mxu1 %v2764_v43  ;;  %v2058_v43 = vld [vmem:[#allocation9 + $0x60] sm:$0xff] }
 0x3d5   : > { %v2758_v46 = vpack.c.bf16 %v2059_v45, %v2058_v43 }
 0x42d   : > { %v1207_v30 = vpop.permute.xlu0 %1206 }
 0x42e   : > { %v1209_v31 = vadd.f32 %v1207_v30, %v1204_v28  ;;  %v3018_v28 = vld [vmem:[#allocation7 + $0x4c] ss:$16 sps:$4 sm:$0xff]  }
 0x42f   : > { %v3021_v30 = vld [vmem:[#allocation7 + $0x6c] ss:$16 sps:$4 sm:$0xff]  }
 0x430   : > { %v1211_v32 = vsel %vm1210_vm7, %v1209_v31, 0.0 }
 0x431   : > { %1212 = vadd.xlane.f32.xlu0 %v1211_v32  ;;  %v3024_v32 = vld [vmem:[#allocation7 + $0x84] ss:$16 sps:$4 sm:$0xff]  }
 0x4be   : > { %v1213_v49 = vpop.xlane.xlu0 %1212 }
 0x4bf   : > { %v1214_v50 = vadd.f32 1e-20, %v1213_v49  ;;  %v2097_v49 = vld [vmem:[#allocation9 + $0x198] sm:$0xff] }
 0x4c1   : > { %3046 = vrcp.f32 %v1214_v50  ;;  %v2768_v50 = vpack.c.bf16 %v2097_v49, %v2096_v48  ;;  %v2101_v48 = vld [vmem:[#allocation9 + $0x1b8] sm:$0xff] }
 0x4cb   : > { %v3047_v51 = vpop.eup %3046 }
 0x4cc   : > { %v1216_v52 = vmul.f32 %v3047_v51, %v1209_v31  ;;  %v3019_v31 = vld [vmem:[#allocation7 + $0x68] ss:$16 sps:$4 sm:$0xff]   ;;  %v2080_v51 = vld [vmem:[#allocation9 + $0x110] sm:$0xff] }
 0x4ce   : > { %v1217_v53 = vpack.c.bf16 %v1216_v52, %v1216_v52  ;;  %v2081_v52 = vld [vmem:[#allocation9 + $0x118] sm:$0xff] }
 0x4d0   : > { %2729 = vmatmul.mubr.msk.bf16.vlgmr.msra.gmra.mrb[8].mxu0 %vm1210_vm7, %v1217_v53  ;;  %v3034_v53 = vld [vmem:[#allocation7 + $0x88] ss:$16 sps:$4 sm:$0xff]  }
 0x4d1   : > { %1790 = vmatprep.mubr.bf16.mxu0 %v3251_v44  ;;  %1759 = vmatpush1.bf16.msra.mxu0 %v2998_v56  ;;  %v2770_v56 = vpack.c.bf16 %v2081_v52, %v2080_v51  ;;  %v2077_v51 = vld [vmem:[#allocation9 + $0xf8] sm:$0xff]  ;;  %v2084_v52 = vld [vmem:[#allocation9 + $0x130] sm:$0xff] }
 0x4d2   : > { %1760 = vmatprep.subr.bf16.mxu0 %v3003_v0 }
 0x4d5   : > { %1761 = vmatpush1.bf16.msra.mxu0 %v3001_v1  ;;  %v3040_v1 = vld [vmem:[#allocation7 + $0xc8] ss:$16 sps:$4 sm:$0xff]  }
 0x4d6   : > { %1762 = vmatprep.subr.bf16.mxu0 %v3006_v2  ;;  %v3045_v2 = vld [vmem:[#allocation7 + $0xec] ss:$16 sps:$4 sm:$0xff]  }
 0x4d9   : > { %1763 = vmatpush1.bf16.msra.mxu0 %v3004_v3  ;;  %v2062_v3 = vld [vmem:[#allocation9 + $0x80] sm:$0xff] }
 0x4da   : > { %1764 = vmatprep.subr.bf16.mxu0 %v3009_v4  ;;  %v2063_v4 = vld [vmem:[#allocation9 + $0x88] sm:$0xff] }
 0x4dd   : > { %1765 = vmatpush1.bf16.msra.mxu0 %v3007_v5  ;;  %v3043_v5 = vld [vmem:[#allocation7 + $0xe8] ss:$16 sps:$4 sm:$0xff]  }
 0x4de   : > { %1799 = vmatprep.subr.bf16.mxu0 %v3012_v6  ;;  %v2732_v6 = vpack.c.bf16 %v2063_v4, %v2062_v3  ;;  %v2088_v3 = vld [vmem:[#allocation9 + $0x150] sm:$0xff] }
 0x5a3   : > { %v1261_v58 = vpop.f32.mrb[8].mxu0 }
 0x5a4   : > { %v1267_v59 = vmul.f32 %v1261_v58, %v3552_v17  ;;  %v2730_v60 = vpop.f32.mrb[9].mxu0 }
 0x5a5   : > { %v1264_v61 = vpop.f32.mrb[10].mxu0  ;;  %v2082_v60 = vld [vmem:[#allocation9 + $0x120] sm:$0xff] }
 0x5a6   : > { %v1270_v62 = vpack.c.bf16 %v1267_v59, %v1267_v59  ;;  %v2731_v63 = vpop.f32.mrb[11].mxu0  ;;  %v2772_v59 = vpack.c.bf16 %v2099_v57, %v2098_v54  ;;  %v2083_v61 = vld [vmem:[#allocation9 + $0x128] sm:$0xff]  ;;  %v2085_v54 = vld [vmem:[#allocation9 + $0x138] sm:$0xff] }
 0x5a7   : > { %v3042_v63 = vld [vmem:[#allocation7 + $0xcc] ss:$16 sps:$4 sm:$0xff]   ;;  %v2774_v0 = vpack.c.bf16 %v2083_v61, %v2082_v60  ;;  %v2778_v57 = vpack.c.bf16 %v2085_v54, %v2084_v52 }
 0x5a8   : > { %1645 = vmatmul.mubr.bf16.vlgmr.msra.gmra.mrb[0].mxu1 %v1270_v62  ;;  %v3037_v62 = vld [vmem:[#allocation7 + $0xa8] ss:$16 sps:$4 sm:$0xff]  }
 0x5a9   : > { %2767 = vmatpush3.bf16.msra.mxu1 %v2766_v47  ;;  %v2100_v47 = vld [vmem:[#allocation9 + $0x1b0] sm:$0xff]  ;;  %v2103_v60 = vld [vmem:[#allocation9 + $0x1c8] sm:$0xff] }
 0x5aa   : > { %2769 = vmatprep.subr.bf16.mxu1 %v2768_v50  ;;  %v2776_v49 = vpack.c.bf16 %v2101_v48, %v2100_v47  ;;  %v2076_v50 = vld [vmem:[#allocation9 + $0xf0] sm:$0xff] }
 0x5ad   : > { %2771 = vmatpush3.bf16.msra.mxu1 %v2770_v56  ;;  %v2061_v56 = vld [vmem:[#allocation9 + $0x78] sm:$0xff] }
 0x5ae   : > { %2773 = vmatprep.subr.bf16.mxu1 %v2772_v59  ;;  %v2102_v59 = vld [vmem:[#allocation9 + $0x1c0] sm:$0xff] }
 0x5af   : > { %v2780_v61 = vpack.c.bf16 %v2103_v60, %v2102_v59 }
 0x5b1   : > { %2775 = vmatpush3.bf16.msra.mxu1 %v2774_v0 }
 0x5b2   : > { %2777 = vmatprep.subr.bf16.mxu1 %v2776_v49 }
 0x5b5   : > { %2779 = vmatpush3.bf16.msra.mxu1 %v2778_v57 }
 0x5b6   : > { %2781 = vmatprep.subr.bf16.mxu1 %v2780_v61 }
 0x67b   : > { %v1646_v14 = vpop.f32.mrb[0].mxu1 }
 0x67c   : > { %v2796_v15 = vadd.f32 %v1646_v14, %v1324_v12  ;;  %v1648_v16 = vpop.f32.mrb[1].mxu1  ;;  %v2048_v12 = vld [vmem:[#allocation9 + $0x10] sm:$0xff]  ;;  %v2066_v14 = vld [vmem:[#allocation9 + $0xa0] sm:$0xff] }
 0x67d   : > { %v2797_v17 = vadd.f32 %v1648_v16, %v1328_v13  ;;  %v1650_v18 = vpop.f32.mrb[2].mxu1  ;;  %v2049_v13 = vld [vmem:[#allocation9 + $0x18] sm:$0xff] }
 0x67e   : > { %3048 = vtanh.f32 %v2796_v15  ;;  %v1651_v19 = vpop.f32.mrb[3].mxu1  ;;  %v2067_v15 = vld [vmem:[#allocation9 + $0xa8] sm:$0xff]  ;;  %v2738_v16 = vpack.c.bf16 %v2049_v13, %v2048_v12  ;;  %v2050_v18 = vld [vmem:[#allocation9 + $0x20] sm:$0xff] }
 0x67f   : > { %3050 = vtanh.f32 %v2797_v17  ;;  %v2740_v17 = vpack.c.bf16 %v2067_v15, %v2066_v14  ;;  %v2051_v19 = vld [vmem:[#allocation9 + $0x28] sm:$0xff] }
 0x688   : > { %v3049_v20 = vpop.eup %3048 }
 0x689   : > { %v3051_v22 = vpop.eup %3050  ;;  %v1655_v23 = vpack.c.bf16 %v3049_v20, %v3049_v20  ;;  %v2068_v20 = vld [vmem:[#allocation9 + $0xb0] sm:$0xff] }
 0x68a   : > { %v1656_v25 = vpack.c.bf16 %v3051_v22, %v3051_v22  ;;  %v2742_v22 = vpack.c.bf16 %v2051_v19, %v2050_v18  ;;  %v2092_v19 = vld [vmem:[#allocation9 + $0x170] sm:$0xff] }
 0x68b   : > { %1870 = vrot.lane.b32.xlu1 %v1655_v23, %s3253_s12  ;;  %2568 = vmatmul.mubr.msk.bf16.vlgmr.msra.gmra.mrb[12].mxu0 %vm1754_vm8, %v1655_v23 }
 0x68c   : > { %1800 = vmatpush1.bf16.msra.mxu0 %v3010_v21  ;;  %v3566_v27 = vunpack.c.l.bf16 %v1656_v25  ;;  %1831 = vmatprep.mubr.bf16.mxu0 %v3251_v44  ;;  %v2069_v21 = vld [vmem:[#allocation9 + $0xb8] sm:$0xff] }
 0x68d   : > { %1801 = vmatprep.subr.bf16.mxu0 %v3015_v24  ;;  %v2052_v24 = vld [vmem:[#allocation9 + $0x30] sm:$0xff]  ;;  %v2053_v25 = vld [vmem:[#allocation9 + $0x38] sm:$0xff] }
 0x68f   : > { %1841 = vrot.lane.b32.xlu1 %v3566_v27, %s3253_s12 }
 0x690   : > { %1802 = vmatpush1.bf16.msra.mxu0 %v3013_v26  ;;  %v2070_v26 = vld [vmem:[#allocation9 + $0xc0] sm:$0xff] }
 0x691   : > { %1803 = vmatprep.subr.bf16.mxu0 %v3018_v28  ;;  %v2071_v28 = vld [vmem:[#allocation9 + $0xc8] sm:$0xff] }
 0x694   : > { %1804 = vmatpush1.bf16.msra.mxu0 %v3016_v29  ;;  %v2746_v29 = vpack.c.bf16 %v2053_v25, %v2052_v24 }
 0x695   : > { %1805 = vmatprep.subr.bf16.mxu0 %v3021_v30  ;;  %v2748_v30 = vpack.c.bf16 %v2071_v28, %v2070_v26 }
 0x698   : > { %1806 = vmatpush1.bf16.msra.mxu0 %v3019_v31  ;;  %v2054_v31 = vld [vmem:[#allocation9 + $0x40] sm:$0xff] }
 0x699   : > { %1955 = vmatprep.subr.bf16.mxu0 %v3024_v32  ;;  %v2055_v32 = vld [vmem:[#allocation9 + $0x48] sm:$0xff] }
 0x69b   : > { %2569 = vmatmul.mubr.msk.bf16.vlgmr.msra.gmra.mrb[16].mxu0 %vm1754_vm8, %v1655_v23  ;;  %v2744_v23 = vpack.c.bf16 %v2069_v21, %v2068_v20  ;;  %v2093_v20 = vld [vmem:[#allocation9 + $0x178] sm:$0xff] }
 0x69c   : > { %1956 = vmatpush1.bf16.msra.mxu0 %v3022_v33  ;;  %1987 = vmatprep.mubr.bf16.mxu0 %v3251_v44  ;;  %v2072_v33 = vld [vmem:[#allocation9 + $0xd0] sm:$0xff]  ;;  %v2794_v21 = vpack.c.bf16 %v2093_v20, %v2092_v19 }
 0x69d   : > { %1957 = vmatprep.subr.bf16.mxu0 %v3027_v34  ;;  %v2073_v34 = vld [vmem:[#allocation9 + $0xd8] sm:$0xff] }
 0x6a0   : > { %1958 = vmatpush1.bf16.msra.mxu0 %v3025_v35  ;;  %v2750_v35 = vpack.c.bf16 %v2055_v32, %v2054_v31 }
 0x6a1   : > { %1959 = vmatprep.subr.bf16.mxu0 %v3030_v36  ;;  %v2752_v36 = vpack.c.bf16 %v2073_v34, %v2072_v33 }
 0x6a4   : > { %1960 = vmatpush1.bf16.msra.mxu0 %v3028_v37  ;;  %v2056_v37 = vld [vmem:[#allocation9 + $0x50] sm:$0xff] }
 0x6a5   : > { %1961 = vmatprep.subr.bf16.mxu0 %v3033_v38  ;;  %v2057_v38 = vld [vmem:[#allocation9 + $0x58] sm:$0xff] }
 0x6a6   : > { %v2754_v41 = vpack.c.bf16 %v2057_v38, %v2056_v37 }
 0x6a8   : > { %1962 = vmatpush1.bf16.msra.mxu0 %v3031_v39  ;;  %v2074_v39 = vld [vmem:[#allocation9 + $0xe0] sm:$0xff] }
 0x6a9   : > { %1996 = vmatprep.subr.bf16.mxu0 %v3036_v40  ;;  %v2075_v40 = vld [vmem:[#allocation9 + $0xe8] sm:$0xff] }
 0x6aa   : > { %v2756_v42 = vpack.c.bf16 %v2075_v40, %v2074_v39 }
 0x6fd   : > { %v1871_v58 = vpop.permute.xlu1 %1870 }
 0x6fe   : > { %2586 = vmatmul.mubr.msk.bf16.vlgmr.msra.gmra.mrb[20].mxu0 %vm1754_vm8, %v1871_v58 }
 0x6ff   : > { %1997 = vmatpush1.bf16.msra.mxu0 %v3034_v53  ;;  %2028 = vmatprep.mubr.bf16.mxu0 %v3251_v44  ;;  %v2065_v44 = vld [vmem:[#allocation9 + $0x98] sm:$0xff]  ;;  %v2760_v53 = vpack.c.bf16 %v2077_v51, %v2076_v50 }
 0x700   : > { %1998 = vmatprep.subr.bf16.mxu0 %v3039_v55  ;;  %v2736_v11 = vpack.c.bf16 %v2065_v44, %v2064_v9  ;;  %v2060_v55 = vld [vmem:[#allocation9 + $0x70] sm:$0xff] }
 0x701   : > { %v1842_v26 = vpop.permute.xlu1 %1841 }
 0x702   : > { %v1844_v28 = vsel %vm1754_vm8, %v3566_v27, %v1842_v26 }
 0x703   : > { %1999 = vmatpush1.bf16.msra.mxu0 %v3037_v62  ;;  %v2086_v62 = vld [vmem:[#allocation9 + $0x140] sm:$0xff] }
 0x704   : > { %2000 = vmatprep.subr.bf16.mxu0 %v3042_v63  ;;  %v2087_v63 = vld [vmem:[#allocation9 + $0x148] sm:$0xff] }
 0x705   : > { %v2782_v0 = vpack.c.bf16 %v2087_v63, %v2086_v62 }
 0x707   : > { %2001 = vmatpush1.bf16.msra.mxu0 %v3040_v1  ;;  %v2104_v1 = vld [vmem:[#allocation9 + $0x1d0] sm:$0xff]  ;;  %2783 = vmatpush3.bf16.msra.mxu1 %v2782_v0 }
 0x708   : > { %2002 = vmatprep.subr.bf16.mxu0 %v3045_v2  ;;  %v2105_v2 = vld [vmem:[#allocation9 + $0x1d8] sm:$0xff] }
 0x709   : > { %v2784_v4 = vpack.c.bf16 %v2105_v2, %v2104_v1 }
 0x70b   : > { %2003 = vmatpush1.bf16.msra.mxu0 %v3043_v5  ;;  %v2089_v5 = vld [vmem:[#allocation9 + $0x158] sm:$0xff]  ;;  %2785 = vmatprep.subr.bf16.mxu1 %v2784_v4 }
 0x70c   : > { %2733 = vmatprep.subr.bf16.mxu0 %v2732_v6  ;;  %v2106_v6 = vld [vmem:[#allocation9 + $0x1e0] sm:$0xff]  ;;  %v2786_v8 = vpack.c.bf16 %v2089_v5, %v2088_v3 }
 0x70d   : > { %v2788_v9 = vpack.c.bf16 %v2107_v7, %v2106_v6 }
 0x70e   : > { %2587 = vmatmul.mubr.msk.bf16.vlgmr.msra.gmra.mrb[24].mxu0 %vm1754_vm8, %v1871_v58  ;;  %v2762_v58 = vpack.c.bf16 %v2061_v56, %v2060_v55  ;;  %2787 = vmatpush3.bf16.msra.mxu1 %v2786_v8 }
 0x70f   : > { %2735 = vmatpush3.bf16.msra.mxu0 %v2734_v10  ;;  %v2090_v10 = vld [vmem:[#allocation9 + $0x160] sm:$0xff]  ;;  %2789 = vmatprep.subr.bf16.mxu1 %v2788_v9 }
 0x710   : > { %2737 = vmatprep.subr.bf16.mxu0 %v2736_v11  ;;  %v2091_v11 = vld [vmem:[#allocation9 + $0x168] sm:$0xff] }
 0x711   : > { %v2790_v13 = vpack.c.bf16 %v2091_v11, %v2090_v10 }
 0x713   : > { %2739 = vmatpush3.bf16.msra.mxu0 %v2738_v16  ;;  %v2108_v16 = vld [vmem:[#allocation9 + $0x1f0] sm:$0xff]  ;;  %2791 = vmatpush3.bf16.msra.mxu1 %v2790_v13 }
 0x714   : > { %2741 = vmatprep.subr.bf16.mxu0 %v2740_v17  ;;  %v2109_v17 = vld [vmem:[#allocation9 + $0x1f8] sm:$0xff] }
 0x715   : > { %v2792_v18 = vpack.c.bf16 %v2109_v17, %v2108_v16 }
 0x717   : > { %2743 = vmatpush3.bf16.msra.mxu0 %v2742_v22  ;;  %2793 = vmatprep.subr.bf16.mxu1 %v2792_v18 }
 0x718   : > { %2745 = vmatprep.subr.bf16.mxu0 %v2744_v23  ;;  %2795 = vmatpush3.bf16.msra.mxu1 %v2794_v21 }
 0x71b   : > { %2747 = vmatpush3.bf16.msra.mxu0 %v2746_v29  ;;  %v2037_v29 = vsel %vm1754_vm8, %v1842_v26, %v3566_v27 }
 0x71c   : > { %2749 = vmatprep.subr.bf16.mxu0 %v2748_v30 }
 0x71f   : > { %2751 = vmatpush3.bf16.msra.mxu0 %v2750_v35 }
 0x720   : > { %2753 = vmatprep.subr.bf16.mxu0 %v2752_v36 }
 0x723   : > { %2755 = vmatpush3.bf16.msra.mxu0 %v2754_v41 }
 0x724   : > { %2757 = vmatprep.subr.bf16.mxu0 %v2756_v42 }
 0x727   : > { %2759 = vmatpush3.bf16.msra.mxu0 %v2758_v46 }
 0x728   : > { %2761 = vmatprep.subr.bf16.mxu0 %v2760_v53  ;;  %v2588_v53 = vld [vmem:[%s3705_s29] ss:$0 sm:$0xff] }
 0x72b   : > { %2763 = vmatpush3.bf16.msra.mxu0 %v2762_v58 }
 0x75e   : > { %v1792_v44 = vpop.f32.mrb[12].mxu0 }
 0x75f   : > { %v1794_v12 = vpop.f32.mrb[13].mxu0  ;;  %v1845_v31 = vmul.f32 %v1844_v28, %v1792_v44 }
 0x760   : > { %v1796_v14 = vpop.f32.mrb[14].mxu0  ;;  %v1846_v34 = vmul.f32 %v1844_v28, %v1794_v12 }
 0x761   : > { %v1797_v15 = vpop.f32.mrb[15].mxu0 }
 0x76e   : > { %v1833_v22 = vpop.f32.mrb[16].mxu0 }
 0x76f   : > { %v1835_v23 = vpop.f32.mrb[17].mxu0  ;;  %v1847_v41 = vmul.f32 %v1844_v28, %v1833_v22 }
 0x770   : > { %v1837_v24 = vpop.f32.mrb[18].mxu0  ;;  %v1848_v45 = vmul.f32 %v1844_v28, %v1835_v23 }
 0x771   : > { %v1838_v25 = vpop.f32.mrb[19].mxu0 }
 0x7d1   : > { %v1989_v30 = vpop.f32.mrb[20].mxu0 }
 0x7d2   : > { %v2038_v32 = vmul.f32 %v2037_v29, %v1989_v30  ;;  %v1991_v33 = vpop.f32.mrb[21].mxu0 }
 0x7d3   : > { %v2039_v35 = vmul.f32 %v2037_v29, %v1991_v33  ;;  %v1993_v36 = vpop.f32.mrb[22].mxu0 }
 0x7d4   : > { %v2042_v37 = vadd.f32 %v2038_v32, %v1845_v31  ;;  %v1994_v38 = vpop.f32.mrb[23].mxu0 }
 0x7d5   : > { %v2043_v39 = vadd.f32 %v2039_v35, %v1846_v34 }
 0x7d7   : > { %2181 = vmatprep.mubr.f32.mxu0 %v2043_v39 }
 0x7d8   : > { %2182 = vmatmul.mubr.f32.vlgmr.msra.gmra.mrb[28].mxu0 %v2042_v37 }
 0x7e1   : > { %v2030_v40 = vpop.f32.mrb[24].mxu0 }
 0x7e2   : > { %v2040_v42 = vmul.f32 %v2037_v29, %v2030_v40  ;;  %v2032_v43 = vpop.f32.mrb[25].mxu0 }
 0x7e3   : > { %v2041_v27 = vmul.f32 %v2037_v29, %v2032_v43  ;;  %v2034_v46 = vpop.f32.mrb[26].mxu0 }
 0x7e4   : > { %v2044_v47 = vadd.f32 %v2040_v42, %v1847_v41  ;;  %v2035_v48 = vpop.f32.mrb[27].mxu0 }
 0x7e5   : > { %v2045_v49 = vadd.f32 %v2041_v27, %v1848_v45 }
 0x7e7   : > { %2251 = vmatprep.mubr.f32.mxu1 %v2045_v49 }
 0x7e8   : > { %2252 = vmatmul.mubr.f32.vlgmr.msra.gmra.mrb[4].mxu1 %v2044_v47 }
 0x8ab   : > { %v2646_v50 = vpop.f32.mrb[28].mxu0 }
 0x8ac   : > { %v2647_v51 = vpop.f32.mrb[29].mxu0 }
 0x8ad   : > { %v2648_v52 = vadd.f32 %v2647_v51, %v2646_v50 }
 0x8af   : > { %v2184_v56 = vadd.f32 %v2648_v52, %v2588_v53 }
 0x8bb   : > { %v2681_v54 = vpop.f32.mrb[4].mxu1 }
 0x8bc   : > { %v2682_v55 = vpop.f32.mrb[5].mxu1 }
 0x8bd   : > { %v2683_v57 = vadd.f32 %v2682_v55, %v2681_v54 }
 0x8bf   : > { %v2254_v58 = vadd.f32 %v2683_v57, %v2184_v56 }
 0x8c1   : > { %2257 = vst [vmem:[%s574_s28] sm:$0xff] %v2254_v58 }
 0x8c2   : > { %3149 = shalt.err (!%p3146_p11)
}
 0x8c3   : > { %s3150_s18 = scalar_lea.hbm %s3589_s15, 128  ;;  %s3154_s8 = scalar_lea.hbm %s3706_s13, 512 }
 0x8c4   : > { %p3151_p13 = scmp.ne.s32.totalorder %s3589_s15, %s3150_s18  ;;  %p3155_p0 = scmp.lt.u32.totalorder %s3589_s15, %s3706_s13 }
 0x8c5   : > { %p3156_p2 = scmp.lt.u32.totalorder %s3154_s8, %s3150_s18  ;;  %p3158_p12 = scmp.lt.u32.totalorder %s3150_s18, %s3589_s15 }
 0x8c6   : > { %p3152_p3 = pnand %p3151_p13, %p3708_p1 }
 0x8c7   : > { %p3157_p10 = por %p3156_p2, %p3155_p0 }
 0x8c8   : > { %p3153_p8 = pneg %p3152_p3 }
 0x8c9   : > { %p3159_p4 = por %p3158_p12, %p3157_p10 }
 0x8cb   : > { %p3160_p5 = pnand %p3159_p4, %p3153_p8 }
 0x8cd   : > { %3163 = shalt.err (!%p3160_p5)
}
 0x8ce   : > { %2814 = dma.vmem_to_hbm [thread:$0]  (%p3708_p1), %s3591_s16, 128, %s3589_s15, %s2259_s25  }
 0x8cf PF: > { %s3709_s23 = sld [smem:[#allocation18_spill]]  ;;  %s3710_s27 = sld [smem:[#allocation14_spill]] }
 0x8d0   : > { %s3711_s30 = sld [smem:[#allocation22_spill]] }
 0x8d5   : > { %p2836_p6 = scmp.ge.s32.totalorder %s3709_s23, 2  ;;  %s2286_s29 = sand.u32 1, %s3710_s27  }
 0x8d6   : > { %p3712_p7 = scmp.ne.s32.totalorder %s3711_s30, 0  ;;  %s2287_s14 = scalar_lea.sflag [#allocation6], %s2286_s29 }
 0x8d8   : > { %p2827_p9 = pnand %p2836_p6, %p3712_p7 }
 0x8da   : > { %3205 = dma.done.wait (!%p2827_p9), %s2287_s14, 128  }
 0x8db   : > { %3207 = vsyncadd (!%p2827_p9), %s2287_s14, 4294967168  ;;  %s27_s28 = sadd.s32 1, %s3709_s23   ;;  %s3713_s0 = sld [smem:[#allocation15_spill]] }
 0x8dc   : > { %p24_p11 = scmp.ge.s32.totalorder %s27_s28, 6   ;;  %s3714_s23 = sld [smem:[#allocation23_spill]] }
 0x8dd   : > { %s3715_s24 = sld [smem:[#allocation16_spill]]  ;;  %s3716_s25 = sld [smem:[#allocation17_spill]] }
 0x8de   : > { %s3717_s26 = sld [smem:[#allocation19_spill]]  ;;  %s3718_s27 = sld [smem:[#allocation21_spill]] }
 0x8df   : > { %s3719_s21 = smov %s3214_s22  ;;  %26 = sbr.rel (!%p24_p11) target bundleno = 14 (0xe), region = 138 }
 0x8e1   : > { %s3720_s22 = smov %s3713_s0 }
 0x8e6   :  { %2292 = vsyncpa [#allocation5], 1 }
 0x8e7   :  { %2294 = vsyncpa [#allocation5 + $0x1], 1 }
 0x8e8   :  { %2295 = vsyncpa [#allocation8], 1 }
 0x8e9   :  { %2296 = vsyncpa [#allocation6], 1 }
 0x8ea   :  { %2298 = vsyncpa [#allocation6 + $0x1], 1 }

</bundles_post_ra>
